<compile_context>
chip_gen: v5e
topology: v5e:2x2
jax: 0.10.0
libtpu: 0.0.40
codegen_flags: <defaults>
</compile_context>

<pallas_src>
import jax
import jax.numpy as jnp
from jax import lax
from jax.experimental import pallas as pl
from jax.experimental.pallas import tpu as pltpu

# ---- problem sizes (consistent with the module config) ----
N = 8               # batch
CIN = 16            # inplanes
H = W = 16          # spatial
COUT = 32           # int(32 * widen)
OH = OW = 8         # conv output spatial (k=3, stride=2, pad=1)
NPOS = N * OH * OW  # 512 conv output positions
KP = 9 * CIN        # 144: im2col contraction depth
HID = 128           # int(feature_dim * widen)
FEAT = 128          # feature_dim (fc_out_channels for contrast mode)
BN_EPS = 1e-5
TEMP = 0.07
BASE_TEMP = 0.07


def aux_head_kernel(patches_ref, wk_ref, pool_ref, w1_ref, b1_ref, w2_ref,
                    b2_ref, selfmask_ref, posmask_ref, loss_ref, feat_ref):
    """One aux-head instance per grid step; whole-instance blocks in VMEM."""
    # --- Conv2d(16,32,k=3,s=2,p=1,bias=False): ONE (512,144)x(144,32) matmul ---
    # bf16 operands, f32 accumulation, no VMEM accumulator scratch.
    conv = jnp.dot(patches_ref[...], wk_ref[...],
                   preferred_element_type=jnp.float32)              # (512, 32) f32

    # --- BatchNorm2d(32) training-mode stats, reduced on the idle MXU ---
    # (two tiny (1,512)x(512,32) pushes instead of ~250 quarter-occupied VPU adds)
    ones_row = jnp.ones((1, NPOS), jnp.float32)
    s1 = jnp.dot(ones_row, conv, preferred_element_type=jnp.float32)         # (1, 32)
    s2 = jnp.dot(ones_row, conv * conv, preferred_element_type=jnp.float32)  # (1, 32)
    inv_cnt = 1.0 / NPOS
    mean = s1 * inv_cnt
    var = jnp.maximum(s2 * inv_cnt - mean * mean, 0.0)              # clamp >= 0
    act = jnp.maximum((conv - mean) * lax.rsqrt(var + BN_EPS), 0.0)  # BN + ReLU

    # --- AdaptiveAvgPool2d((1,1)) + Flatten via hoisted (8,512) averaging matrix ---
    pooled = jnp.dot(pool_ref[...], act,
                     preferred_element_type=jnp.float32)            # (8, 32)

    # --- Linear(32,128) -> ReLU -> Linear(128,128) (bf16 weights, f32 accumulate) ---
    h1 = jnp.maximum(
        jnp.dot(pooled.astype(jnp.bfloat16), w1_ref[...],
                preferred_element_type=jnp.float32) + b1_ref[...], 0.0)
    feat = (jnp.dot(h1.astype(jnp.bfloat16), w2_ref[...],
                    preferred_element_type=jnp.float32) + b2_ref[...])  # (8, 128)

    # --- F.normalize(dim=1) (torch eps=1e-12), f32, single EUP rsqrt ---
    sumsq = jnp.sum(feat * feat, axis=1, keepdims=True)
    featn = feat * lax.rsqrt(jnp.maximum(sumsq, 1e-24))
    feat_ref[...] = featn

    # --- SupConLoss (contrast_count = anchor_count = 1, temperature=0.07), f32 ---
    logits = lax.dot_general(featn, featn, (((1,), (1,)), ((), ())),
                             preferred_element_type=jnp.float32) * (1.0 / TEMP)
    logits = logits - jnp.max(logits, axis=1, keepdims=True)
    self_mask = selfmask_ref[...]                                   # 1 - eye(N), hoisted
    pos_mask = posmask_ref[...]                                     # label-mask * (1 - eye)
    exp_logits = jnp.exp(logits) * self_mask
    log_prob = logits - jnp.log(jnp.sum(exp_logits, axis=1, keepdims=True))
    pos_cnt = jnp.sum(pos_mask, axis=1, keepdims=True)
    # NOTE: anchors whose class appears exactly once give 0/0 (NaN), matching
    # the reference SupConLoss behaviour (no guard in the reference either).
    mean_log_prob_pos = (jnp.sum(pos_mask * log_prob, axis=1, keepdims=True)
                         * pl.reciprocal(pos_cnt, approx=False))     # (8, 1)
    loss_vec = -(TEMP / BASE_TEMP) * mean_log_prob_pos
    loss_ref[...] = jnp.sum(loss_vec, keepdims=True) * (1.0 / N)     # (1, 1)


def _im2col_nchw(x_nchw):
    """(N,CIN,H,W) -> lane-dense (NPOS, 144) im2col for k=3, stride=2, pad=1.

    Built by XLA in the wrapper (review-blessed: ~288 KB, <0.4 us on v5e);
    column index = (kh*3+kw)*CIN + cin, matching the reshaped conv weight.
    """
    x = jnp.transpose(x_nchw, (0, 2, 3, 1))                       # NHWC
    xp = jnp.pad(x, ((0, 0), (1, 1), (1, 1), (0, 0)))             # (N, 18, 18, CIN)
    taps = [xp[:, kh:kh + 2 * OH:2, kw:kw + 2 * OW:2, :]
            for kh in range(3) for kw in range(3)]                 # 9 x (N, 8, 8, CIN)
    return jnp.stack(taps, axis=3).reshape(NPOS, KP)               # (512, 144)


def _aux_heads_pallas(patches, pos_masks, params):
    """Run `I` independent aux-head instances on a leading 'parallel' grid axis.

    patches  : (I, NPOS, KP) bf16 im2col per instance
    pos_masks: (I, N, N) f32 positive-pair masks (self-contrast already removed)
    Shared parameters stay resident (constant block index across the grid);
    per-instance blocks are double-buffered by BlockSpec pipelining, and on
    v7x the 'parallel' axis is sharded across both TensorCores.
    """
    wconv, w1, b1, w2, b2 = params
    inst = patches.shape[0]

    # parameter prep (pure layout, shared across instances)
    wk = jnp.transpose(wconv, (2, 3, 1, 0)).reshape(KP, COUT).astype(jnp.bfloat16)
    w1t = jnp.transpose(w1).astype(jnp.bfloat16)                   # (COUT, HID)
    w2t = jnp.transpose(w2).astype(jnp.bfloat16)                   # (HID, FEAT)
    b1r = b1.reshape(1, HID).astype(jnp.float32)
    b2r = b2.reshape(1, FEAT).astype(jnp.float32)
    pool_mat = (jnp.repeat(jnp.eye(N, dtype=jnp.float32), OH * OW, axis=1)
                / float(OH * OW))                                  # (8, 512)
    self_mask = 1.0 - jnp.eye(N, dtype=jnp.float32)                # (8, 8)

    def shared(arr):
        return pl.BlockSpec(arr.shape, lambda i: (0, 0))           # all shared are 2-D

    def per_inst(d1, d2):
        return pl.BlockSpec((None, d1, d2), lambda i: (i, 0, 0))

    flops_per = (2 * NPOS * KP * COUT          # conv (single K=144 matmul)
                 + 2 * 2 * NPOS * COUT         # BN stats on MXU
                 + 2 * N * NPOS * COUT         # MXU average pool
                 + 2 * N * COUT * HID          # fc1
                 + 2 * N * HID * FEAT          # fc2
                 + 2 * N * FEAT * N)           # SupCon logits
    bytes_shared = (wk.size * 2 + pool_mat.size * 4 + w1t.size * 2 + b1r.size * 4
                    + w2t.size * 2 + b2r.size * 4 + self_mask.size * 4)
    bytes_per = NPOS * KP * 2 + N * N * 4 + (1 + N * FEAT) * 4
    cost = pl.CostEstimate(
        flops=inst * flops_per,
        transcendentals=inst * (N * N + 3 * N + COUT),
        bytes_accessed=bytes_shared + inst * bytes_per)

    loss, feats = pl.pallas_call(
        aux_head_kernel,
        out_shape=(jax.ShapeDtypeStruct((inst, 1, 1), jnp.float32),
                   jax.ShapeDtypeStruct((inst, N, FEAT), jnp.float32)),
        grid=(inst,),
        in_specs=[per_inst(NPOS, KP),                       # patches
                  shared(wk), shared(pool_mat),
                  shared(w1t), shared(b1r), shared(w2t), shared(b2r),
                  shared(self_mask),
                  per_inst(N, N)],                          # pos_masks
        out_specs=(per_inst(1, 1), per_inst(N, FEAT)),
        compiler_params=pltpu.CompilerParams(
            dimension_semantics=("parallel",)),
        cost_estimate=cost,
    )(patches, wk, pool_mat, w1t, b1r, w2t, b2r, self_mask, pos_masks)
    return loss, feats


@jax.jit
def aux_classifier_forward(x_nchw, target, params):
    """x_nchw: (N, CIN, H, W) f32; target: (N,) int32; params in PyTorch layout.

    Single module forward == the I=1 case of the stacked/parallel-grid path.
    """
    patches = _im2col_nchw(x_nchw).astype(jnp.bfloat16)[None]      # (1, 512, 144)
    label_mask = (target[:, None] == target[None, :]).astype(jnp.float32)
    pos_mask = (label_mask * (1.0 - jnp.eye(N, dtype=jnp.float32)))[None]
    loss, feats = _aux_heads_pallas(patches, pos_mask, params)
    # PyTorch forward returns features after unsqueeze(1): (N, 1, feature_dim)
    return loss[0, 0, 0], feats[0][:, None, :]


if __name__ == "__main__":
    key = jax.random.PRNGKey(0)
    kx, kc, k1, kb1, k2, kb2 = jax.random.split(key, 6)

    x = jax.random.normal(kx, (N, CIN, H, W), jnp.float32)
    # labels with >=2 samples per class (avoids the zero-positive NaN case)
    target = jnp.array([0, 0, 1, 1, 2, 2, 3, 3], jnp.int32)

    # deterministic synthetic parameters, PyTorch layouts
    wconv = 0.1 * jax.random.normal(kc, (COUT, CIN, 3, 3), jnp.float32)   # Conv2d.weight
    w1 = 0.1 * jax.random.normal(k1, (HID, COUT), jnp.float32)            # Linear(32,128).weight
    b1 = 0.1 * jax.random.normal(kb1, (HID,), jnp.float32)                # Linear(32,128).bias
    w2 = 0.1 * jax.random.normal(k2, (FEAT, HID), jnp.float32)            # Linear(128,128).weight
    b2 = 0.1 * jax.random.normal(kb2, (FEAT,), jnp.float32)               # Linear(128,128).bias

    # TODO(synk): BatchNorm running_mean/running_var momentum buffer updates are
    # not produced; this is the training-mode forward only, like the reference call.
    loss, feats = aux_classifier_forward(x, target, (wconv, w1, b1, w2, b2))
    jax.block_until_ready((loss, feats))
    print("KERNEL_OK")
</pallas_src>

<mosaic_0001>
module attributes {stable_mosaic.version = 11 : i64} {
  func.func @aux_head_kernel(%arg0: i32, %arg1: memref<1x512x144xbf16, #tpu.memory_space<vmem>>, %arg2: memref<144x32xbf16, #tpu.memory_space<vmem>>, %arg3: memref<8x512xf32, #tpu.memory_space<vmem>>, %arg4: memref<32x128xbf16, #tpu.memory_space<vmem>>, %arg5: memref<1x128xf32, #tpu.memory_space<vmem>>, %arg6: memref<128x128xbf16, #tpu.memory_space<vmem>>, %arg7: memref<1x128xf32, #tpu.memory_space<vmem>>, %arg8: memref<8x8xf32, #tpu.memory_space<vmem>>, %arg9: memref<1x8x8xf32, #tpu.memory_space<vmem>>, %arg10: memref<1x1x1xf32, #tpu.memory_space<vmem>>, %arg11: memref<1x8x128xf32, #tpu.memory_space<vmem>>) attributes {dimension_semantics = [#tpu.dimension_semantics<parallel>], iteration_bounds = array<i64: 1>, scalar_prefetch = 0 : i64, scratch_operands = 0 : i64, tpu.core_type = #tpu.core_type<tc>, window_params = [{transform_indices = @transform_0, window_bounds = array<i64: 1, 512, 144>}, {pipeline_mode = #tpu.pipeline_mode<synchronous>, transform_indices = @transform_1, window_bounds = array<i64: 144, 32>}, {pipeline_mode = #tpu.pipeline_mode<synchronous>, transform_indices = @transform_2, window_bounds = array<i64: 8, 512>}, {pipeline_mode = #tpu.pipeline_mode<synchronous>, transform_indices = @transform_3, window_bounds = array<i64: 32, 128>}, {pipeline_mode = #tpu.pipeline_mode<synchronous>, transform_indices = @transform_4, window_bounds = array<i64: 1, 128>}, {pipeline_mode = #tpu.pipeline_mode<synchronous>, transform_indices = @transform_5, window_bounds = array<i64: 128, 128>}, {pipeline_mode = #tpu.pipeline_mode<synchronous>, transform_indices = @transform_6, window_bounds = array<i64: 1, 128>}, {pipeline_mode = #tpu.pipeline_mode<synchronous>, transform_indices = @transform_7, window_bounds = array<i64: 8, 8>}, {transform_indices = @transform_8, window_bounds = array<i64: 1, 8, 8>}, {transform_indices = @transform_9, window_bounds = array<i64: 1, 1, 1>}, {transform_indices = @transform_10, window_bounds = array<i64: 1, 8, 128>}]} {
    %c0 = arith.constant 0 : index
    %c0_0 = arith.constant 0 : index
    %c0_1 = arith.constant 0 : index
    %0 = vector.load %arg1[%c0, %c0_0, %c0_1] : memref<1x512x144xbf16, #tpu.memory_space<vmem>>, vector<1x512x144xbf16>
    %1 = vector.shape_cast %0 : vector<1x512x144xbf16> to vector<512x144xbf16>
    %c0_2 = arith.constant 0 : index
    %c0_3 = arith.constant 0 : index
    %2 = vector.load %arg2[%c0_2, %c0_3] : memref<144x32xbf16, #tpu.memory_space<vmem>>, vector<144x32xbf16>
    %cst = arith.constant dense<0.000000e+00> : vector<512x32xf32>
    %3 = tpu.matmul %1, %2, %cst {dimension_numbers = #tpu.dot_dimension_numbers<[1], [0], [0], [1], [0, 0, 1, 1], [], []>} : vector<512x144xbf16>, vector<144x32xbf16>, vector<512x32xf32> -> vector<512x32xf32>
    %cst_4 = arith.constant 1.000000e+00 : f32
    %4 = vector.broadcast %cst_4 : f32 to vector<1x512xf32>
    %cst_5 = arith.constant dense<0.000000e+00> : vector<1x32xf32>
    %5 = tpu.matmul %4, %3, %cst_5 {dimension_numbers = #tpu.dot_dimension_numbers<[1], [0], [0], [1], [0, 0, 1, 1], [], []>} : vector<1x512xf32>, vector<512x32xf32>, vector<1x32xf32> -> vector<1x32xf32>
    %6 = arith.mulf %3, %3 : vector<512x32xf32>
    %cst_6 = arith.constant dense<0.000000e+00> : vector<1x32xf32>
    %7 = tpu.matmul %4, %6, %cst_6 {dimension_numbers = #tpu.dot_dimension_numbers<[1], [0], [0], [1], [0, 0, 1, 1], [], []>} : vector<1x512xf32>, vector<512x32xf32>, vector<1x32xf32> -> vector<1x32xf32>
    %cst_7 = arith.constant 0.001953125 : f32
    %8 = vector.broadcast %cst_7 : f32 to vector<1x32xf32>
    %9 = arith.mulf %5, %8 : vector<1x32xf32>
    %cst_8 = arith.constant 0.001953125 : f32
    %10 = vector.broadcast %cst_8 : f32 to vector<1x32xf32>
    %11 = arith.mulf %7, %10 : vector<1x32xf32>
    %12 = arith.mulf %9, %9 : vector<1x32xf32>
    %13 = arith.subf %11, %12 : vector<1x32xf32>
    %cst_9 = arith.constant 0.000000e+00 : f32
    %14 = vector.broadcast %cst_9 : f32 to vector<1x32xf32>
    %15 = arith.maximumf %13, %14 : vector<1x32xf32>
    %16 = vector.broadcast %9 : vector<1x32xf32> to vector<512x32xf32>
    %17 = arith.subf %3, %16 : vector<512x32xf32>
    %cst_10 = arith.constant 9.99999974E-6 : f32
    %18 = vector.broadcast %cst_10 : f32 to vector<1x32xf32>
    %19 = arith.addf %15, %18 : vector<1x32xf32>
    %20 = math.rsqrt %19 : vector<1x32xf32>
    %21 = vector.broadcast %20 : vector<1x32xf32> to vector<512x32xf32>
    %22 = arith.mulf %17, %21 : vector<512x32xf32>
    %cst_11 = arith.constant 0.000000e+00 : f32
    %23 = vector.broadcast %cst_11 : f32 to vector<512x32xf32>
    %24 = arith.maximumf %22, %23 : vector<512x32xf32>
    %c0_12 = arith.constant 0 : index
    %c0_13 = arith.constant 0 : index
    %25 = vector.load %arg3[%c0_12, %c0_13] : memref<8x512xf32, #tpu.memory_space<vmem>>, vector<8x512xf32>
    %cst_14 = arith.constant dense<0.000000e+00> : vector<8x32xf32>
    %26 = tpu.matmul %25, %24, %cst_14 {dimension_numbers = #tpu.dot_dimension_numbers<[1], [0], [0], [1], [0, 0, 1, 1], [], []>} : vector<8x512xf32>, vector<512x32xf32>, vector<8x32xf32> -> vector<8x32xf32>
    %27 = arith.truncf %26 : vector<8x32xf32> to vector<8x32xbf16>
    %c0_15 = arith.constant 0 : index
    %c0_16 = arith.constant 0 : index
    %28 = vector.load %arg4[%c0_15, %c0_16] : memref<32x128xbf16, #tpu.memory_space<vmem>>, vector<32x128xbf16>
    %cst_17 = arith.constant dense<0.000000e+00> : vector<8x128xf32>
    %29 = tpu.matmul %27, %28, %cst_17 {dimension_numbers = #tpu.dot_dimension_numbers<[1], [0], [0], [1], [0, 0, 1, 1], [], []>} : vector<8x32xbf16>, vector<32x128xbf16>, vector<8x128xf32> -> vector<8x128xf32>
    %c0_18 = arith.constant 0 : index
    %c0_19 = arith.constant 0 : index
    %30 = vector.load %arg5[%c0_18, %c0_19] : memref<1x128xf32, #tpu.memory_space<vmem>>, vector<1x128xf32>
    %31 = vector.broadcast %30 : vector<1x128xf32> to vector<8x128xf32>
    %32 = arith.addf %29, %31 : vector<8x128xf32>
    %cst_20 = arith.constant 0.000000e+00 : f32
    %33 = vector.broadcast %cst_20 : f32 to vector<8x128xf32>
    %34 = arith.maximumf %32, %33 : vector<8x128xf32>
    %35 = arith.truncf %34 : vector<8x128xf32> to vector<8x128xbf16>
    %c0_21 = arith.constant 0 : index
    %c0_22 = arith.constant 0 : index
    %36 = vector.load %arg6[%c0_21, %c0_22] : memref<128x128xbf16, #tpu.memory_space<vmem>>, vector<128x128xbf16>
    %cst_23 = arith.constant dense<0.000000e+00> : vector<8x128xf32>
    %37 = tpu.matmul %35, %36, %cst_23 {dimension_numbers = #tpu.dot_dimension_numbers<[1], [0], [0], [1], [0, 0, 1, 1], [], []>} : vector<8x128xbf16>, vector<128x128xbf16>, vector<8x128xf32> -> vector<8x128xf32>
    %c0_24 = arith.constant 0 : index
    %c0_25 = arith.constant 0 : index
    %38 = vector.load %arg7[%c0_24, %c0_25] : memref<1x128xf32, #tpu.memory_space<vmem>>, vector<1x128xf32>
    %39 = vector.broadcast %38 : vector<1x128xf32> to vector<8x128xf32>
    %40 = arith.addf %37, %39 : vector<8x128xf32>
    %41 = arith.mulf %40, %40 : vector<8x128xf32>
    %cst_26 = arith.constant dense<0.000000e+00> : vector<8xf32>
    %42 = vector.multi_reduction <add>, %41, %cst_26 [1] : vector<8x128xf32> to vector<8xf32>
    %43 = vector.shape_cast %42 : vector<8xf32> to vector<8x1xf32>
    %cst_27 = arith.constant 1.000000e-24 : f32
    %44 = vector.broadcast %cst_27 : f32 to vector<8x1xf32>
    %45 = arith.maximumf %43, %44 : vector<8x1xf32>
    %46 = math.rsqrt %45 : vector<8x1xf32>
    %47 = vector.broadcast %46 : vector<8x1xf32> to vector<8x128xf32>
    %48 = arith.mulf %40, %47 : vector<8x128xf32>
    %c0_28 = arith.constant 0 : index
    %c0_29 = arith.constant 0 : index
    %c0_30 = arith.constant 0 : index
    %49 = vector.load %arg11[%c0_28, %c0_29, %c0_30] : memref<1x8x128xf32, #tpu.memory_space<vmem>>, vector<1x8x128xf32>
    %50 = vector.shape_cast %49 : vector<1x8x128xf32> to vector<8x128xf32>
    %51 = vector.shape_cast %48 : vector<8x128xf32> to vector<1x8x128xf32>
    tpu.vector_store %arg11[%c0_28, %c0_29, %c0_30], %51 {strides = array<i32>} : memref<1x8x128xf32, #tpu.memory_space<vmem>>, vector<1x8x128xf32>,
    %cst_31 = arith.constant dense<0.000000e+00> : vector<8x8xf32>
    %52 = tpu.matmul %48, %48, %cst_31 {dimension_numbers = #tpu.dot_dimension_numbers<[1], [1], [0], [0], [0, 0, 1, 0], [], []>} : vector<8x128xf32>, vector<8x128xf32>, vector<8x8xf32> -> vector<8x8xf32>
    %cst_32 = arith.constant 14.2857141 : f32
    %53 = vector.broadcast %cst_32 : f32 to vector<8x8xf32>
    %54 = arith.mulf %52, %53 : vector<8x8xf32>
    %cst_33 = arith.constant dense<0xFF800000> : vector<8xf32>
    %55 = vector.multi_reduction <maximumf>, %54, %cst_33 [1] : vector<8x8xf32> to vector<8xf32>
    %56 = vector.shape_cast %55 : vector<8xf32> to vector<8x1xf32>
    %57 = vector.broadcast %56 : vector<8x1xf32> to vector<8x8xf32>
    %58 = arith.subf %54, %57 : vector<8x8xf32>
    %c0_34 = arith.constant 0 : index
    %c0_35 = arith.constant 0 : index
    %59 = vector.load %arg8[%c0_34, %c0_35] : memref<8x8xf32, #tpu.memory_space<vmem>>, vector<8x8xf32>
    %c0_36 = arith.constant 0 : index
    %c0_37 = arith.constant 0 : index
    %c0_38 = arith.constant 0 : index
    %60 = vector.load %arg9[%c0_36, %c0_37, %c0_38] : memref<1x8x8xf32, #tpu.memory_space<vmem>>, vector<1x8x8xf32>
    %61 = vector.shape_cast %60 : vector<1x8x8xf32> to vector<8x8xf32>
    %62 = math.exp %58 : vector<8x8xf32>
    %63 = arith.mulf %62, %59 : vector<8x8xf32>
    %cst_39 = arith.constant dense<0.000000e+00> : vector<8xf32>
    %64 = vector.multi_reduction <add>, %63, %cst_39 [1] : vector<8x8xf32> to vector<8xf32>
    %65 = vector.shape_cast %64 : vector<8xf32> to vector<8x1xf32>
    %66 = math.log %65 : vector<8x1xf32>
    %67 = vector.broadcast %66 : vector<8x1xf32> to vector<8x8xf32>
    %68 = arith.subf %58, %67 : vector<8x8xf32>
    %cst_40 = arith.constant dense<0.000000e+00> : vector<8xf32>
    %69 = vector.multi_reduction <add>, %61, %cst_40 [1] : vector<8x8xf32> to vector<8xf32>
    %70 = vector.shape_cast %69 : vector<8xf32> to vector<8x1xf32>
    %71 = arith.mulf %61, %68 : vector<8x8xf32>
    %cst_41 = arith.constant dense<0.000000e+00> : vector<8xf32>
    %72 = vector.multi_reduction <add>, %71, %cst_41 [1] : vector<8x8xf32> to vector<8xf32>
    %73 = vector.shape_cast %72 : vector<8xf32> to vector<8x1xf32>
    %74 = tpu.reciprocal %70 : vector<8x1xf32> -> vector<8x1xf32>
    %75 = arith.mulf %73, %74 : vector<8x1xf32>
    %cst_42 = arith.constant -1.000000e+00 : f32
    %76 = vector.broadcast %cst_42 : f32 to vector<8x1xf32>
    %77 = arith.mulf %76, %75 : vector<8x1xf32>
    %78 = vector.shape_cast %77 : vector<8x1xf32> to vector<1x8x1xf32>
    %cst_43 = arith.constant dense<0.000000e+00> : vector<1xf32>
    %79 = vector.multi_reduction <add>, %78, %cst_43 [1, 2] : vector<1x8x1xf32> to vector<1xf32>
    %80 = vector.shape_cast %79 : vector<1xf32> to vector<1x1x1xf32>
    %81 = vector.extract %80[0, 0, 0] : f32 from vector<1x1x1xf32>
    %82 = vector.broadcast %81 : f32 to vector<1x1xf32>
    %cst_44 = arith.constant 1.250000e-01 : f32
    %83 = vector.broadcast %cst_44 : f32 to vector<1x1xf32>
    %84 = arith.mulf %82, %83 : vector<1x1xf32>
    %c0_45 = arith.constant 0 : index
    %c0_46 = arith.constant 0 : index
    %c0_47 = arith.constant 0 : index
    %85 = vector.load %arg10[%c0_45, %c0_46, %c0_47] : memref<1x1x1xf32, #tpu.memory_space<vmem>>, vector<1x1x1xf32>
    %86 = vector.shape_cast %85 : vector<1x1x1xf32> to vector<1x1xf32>
    %87 = vector.shape_cast %84 : vector<1x1xf32> to vector<1x1x1xf32>
    tpu.vector_store %arg10[%c0_45, %c0_46, %c0_47], %87 {strides = array<i32>} : memref<1x1x1xf32, #tpu.memory_space<vmem>>, vector<1x1x1xf32>,
    return
  }
  func.func @transform_0(%arg0: i32) -> (i32, i32, i32) {
    %c0_i32 = arith.constant 0 : i32
    %c0_i32_0 = arith.constant 0 : i32
    %c0_i32_1 = arith.constant 0 : i32
    return %arg0, %c0_i32, %c0_i32_0 : i32, i32, i32
  }
  func.func @transform_1(%arg0: i32) -> (i32, i32) {
    %c0_i32 = arith.constant 0 : i32
    %c0_i32_0 = arith.constant 0 : i32
    %c0_i32_1 = arith.constant 0 : i32
    return %c0_i32, %c0_i32_0 : i32, i32
  }
  func.func @transform_2(%arg0: i32) -> (i32, i32) {
    %c0_i32 = arith.constant 0 : i32
    %c0_i32_0 = arith.constant 0 : i32
    %c0_i32_1 = arith.constant 0 : i32
    return %c0_i32, %c0_i32_0 : i32, i32
  }
  func.func @transform_3(%arg0: i32) -> (i32, i32) {
    %c0_i32 = arith.constant 0 : i32
    %c0_i32_0 = arith.constant 0 : i32
    %c0_i32_1 = arith.constant 0 : i32
    return %c0_i32, %c0_i32_0 : i32, i32
  }
  func.func @transform_4(%arg0: i32) -> (i32, i32) {
    %c0_i32 = arith.constant 0 : i32
    %c0_i32_0 = arith.constant 0 : i32
    %c0_i32_1 = arith.constant 0 : i32
    return %c0_i32, %c0_i32_0 : i32, i32
  }
  func.func @transform_5(%arg0: i32) -> (i32, i32) {
    %c0_i32 = arith.constant 0 : i32
    %c0_i32_0 = arith.constant 0 : i32
    %c0_i32_1 = arith.constant 0 : i32
    return %c0_i32, %c0_i32_0 : i32, i32
  }
  func.func @transform_6(%arg0: i32) -> (i32, i32) {
    %c0_i32 = arith.constant 0 : i32
    %c0_i32_0 = arith.constant 0 : i32
    %c0_i32_1 = arith.constant 0 : i32
    return %c0_i32, %c0_i32_0 : i32, i32
  }
  func.func @transform_7(%arg0: i32) -> (i32, i32) {
    %c0_i32 = arith.constant 0 : i32
    %c0_i32_0 = arith.constant 0 : i32
    %c0_i32_1 = arith.constant 0 : i32
    return %c0_i32, %c0_i32_0 : i32, i32
  }
  func.func @transform_8(%arg0: i32) -> (i32, i32, i32) {
    %c0_i32 = arith.constant 0 : i32
    %c0_i32_0 = arith.constant 0 : i32
    %c0_i32_1 = arith.constant 0 : i32
    return %arg0, %c0_i32, %c0_i32_0 : i32, i32, i32
  }
  func.func @transform_9(%arg0: i32) -> (i32, i32, i32) {
    %c0_i32 = arith.constant 0 : i32
    %c0_i32_0 = arith.constant 0 : i32
    %c0_i32_1 = arith.constant 0 : i32
    return %arg0, %c0_i32, %c0_i32_0 : i32, i32, i32
  }
  func.func @transform_10(%arg0: i32) -> (i32, i32, i32) {
    %c0_i32 = arith.constant 0 : i32
    %c0_i32_0 = arith.constant 0 : i32
    %c0_i32_1 = arith.constant 0 : i32
    return %arg0, %c0_i32, %c0_i32_0 : i32, i32, i32
  }
}

</mosaic_0001>

<bundles_post_ra>
// kernel: aux_classifier_forward.1
= control target key start
LH: loop header
LB: loop body
LE: loop exit
PB: predicated region body
PF: predicated region fallthrough
CT: control target
= control target key end

     0   :  { %16 = vsyncpa [#allocation3], 0  ;;  %vm461_vm0 = vcmask 130048   ;;  %s3357_s0 = inlined_call_operand.vmem [shape: bf16[1,512,144], index: 0, kind: input, shape index: {}]   ;;  %s3358_s1 = inlined_call_operand.vmem [shape: bf16[144,32], index: 1, kind: input, shape index: {}]   ;;  %s3359_s2 = inlined_call_operand.vmem [shape: f32[8,512], index: 2, kind: input, shape index: {}]   ;;  %s3360_s3 = inlined_call_operand.vmem [shape: bf16[32,128], index: 3, kind: input, shape index: {}]   ;;  %s3361_s4 = inlined_call_operand.vmem [shape: f32[1,128], index: 4, kind: input, shape index: {}]   ;;  %s3362_s5 = inlined_call_operand.vmem [shape: bf16[128,128], index: 5, kind: input, shape index: {}]   ;;  %s3363_s6 = inlined_call_operand.vmem [shape: f32[1,128], index: 6, kind: input, shape index: {}]   ;;  %s3364_s7 = inlined_call_operand.vmem [shape: f32[8,8], index: 7, kind: input, shape index: {}]   ;;  %s3365_s8 = inlined_call_operand.vmem [shape: f32[1,8,8], index: 8, kind: input, shape index: {}]   ;;  %s3366_s9 = inlined_call_operand.hbm [shape: f32[1,1,1], index: 9, kind: output, shape index: {0}]   ;;  %s3367_s10 = inlined_call_operand.hbm [shape: f32[1,8,128], index: 10, kind: output, shape index: {1}]  }
   0x1   :  { %v2094_v0 = vld [vmem:[%s3358_s1 + $0x38] sm:$0xff]  ;;  %v2095_v1 = vld [vmem:[%s3358_s1 + $0x40] sm:$0xff]  ;;  %v1662_v3 = vld [vmem:[%s3357_s0 + $0x8] sm:$0xf0] }
   0x2   :  { %v2023_v2 = vld [vmem:[%s3357_s0 + $0x4] sm:$0xf]  ;;  %558 = vmatpush.bf16.msra.mxu0 %v2094_v0  ;;  %734 = vmatpush.bf16.msra.mxu1 %v2095_v1  ;;  %v2093_v5 = vld [vmem:[%s3358_s1 + $0x30] sm:$0xff]  ;;  %v2092_v6 = vld [vmem:[%s3358_s1 + $0x28] sm:$0xff] }
   0x3   :  { %v1665_v4 = vor.u32 %v2023_v2, %v1662_v3  ;;  %2106 = vmatpush.bf16.msra.mxu2 %v2094_v0  ;;  %2114 = vmatpush.bf16.msra.mxu3 %v2095_v1 }
   0x5   :  { %1950 = vmatmul.msk.bf16.vlgmr.msra.gmra.mxu1 %vm461_vm0, %v1665_v4 }
   0x6   :  { %559 = vmatpush.bf16.msra.mxu0 %v2093_v5 }
   0x7   :  { %2107 = vmatpush.bf16.msra.mxu2 %v2093_v5 }
   0x8   :  { %17 = vsyncpa [#allocation5], 0  ;;  %v2091_v7 = vld [vmem:[%s3358_s1 + $0x20] sm:$0xff]  ;;  %v2090_v8 = vld [vmem:[%s3358_s1 + $0x18] sm:$0xff]  ;;  %vm1435_vm4 = vcmask 261120   ;;  %vm1572_vm8 = vcmask 64512  }
   0x9   :  { %v2025_v9 = vld [vmem:[%s3357_s0 + $0x14] sm:$0xf]  ;;  %v1670_v10 = vld [vmem:[%s3357_s0 + $0x18] sm:$0xf0]  ;;  %v2088_v13 = vld [vmem:[%s3358_s1 + $0x8] sm:$0xff]  ;;  %vm1611_vm13 = vcmask 7168  }
   0xa   :  { %560 = vmatpush.bf16.msra.mxu0 %v2092_v6  ;;  %v1673_v11 = vor.u32 %v2025_v9, %v1670_v10  ;;  %v2089_v12 = vld [vmem:[%s3358_s1 + $0x10] sm:$0xff]  ;;  %v2087_v14 = vld [vmem:[%s3358_s1] sm:$0xff]  ;;  %v2024_v16 = vld [vmem:[%s3357_s0 + $0x4] sm:$0xf0]  ;;  %s1644_s25 = sshll.u32 %s3367_s10, 4  ;;  %s2186_s26 = smov [#allocation2]   ;;  %s1645_s25 = int_to_ptr.hbm [resolvable:$true] %s1644_s25 }
   0xb   :  { %2108 = vmatpush.bf16.msra.mxu2 %v2092_v6  ;;  %v1660_v15 = vld [vmem:[%s3357_s0] sm:$0xf]  ;;  %v2027_v18 = vld [vmem:[%s3357_s0 + $0x24] sm:$0xf]  ;;  %v1678_v19 = vld [vmem:[%s3357_s0 + $0x28] sm:$0xf0] }
   0xc   :  { %v1661_v17 = vor.u32 %v2024_v16, %v1660_v15  ;;  %v1681_v20 = vor.u32 %v2027_v18, %v1678_v19  ;;  %v1668_v21 = vld [vmem:[%s3357_s0 + $0x10] sm:$0xf]  ;;  %v2026_v22 = vld [vmem:[%s3357_s0 + $0x14] sm:$0xf0]  ;;  %v2029_v24 = vld [vmem:[%s3357_s0 + $0x34] sm:$0xf] }
   0xd   :  { %v1669_v23 = vor.u32 %v2026_v22, %v1668_v21  ;;  %v1686_v25 = vld [vmem:[%s3357_s0 + $0x38] sm:$0xf0]  ;;  %v1676_v27 = vld [vmem:[%s3357_s0 + $0x20] sm:$0xf]  ;;  %v2028_v28 = vld [vmem:[%s3357_s0 + $0x24] sm:$0xf0] }
   0xe   :  { %561 = vmatpush.bf16.msra.mxu0 %v2091_v7  ;;  %v1689_v26 = vor.u32 %v2029_v24, %v1686_v25  ;;  %v1677_v29 = vor.u32 %v2028_v28, %v1676_v27  ;;  %v2031_v30 = vld [vmem:[%s3357_s0 + $0x44] sm:$0xf]  ;;  %v1694_v31 = vld [vmem:[%s3357_s0 + $0x48] sm:$0xf0]  ;;  %v1684_v33 = vld [vmem:[%s3357_s0 + $0x30] sm:$0xf] }
   0xf   :  { %2109 = vmatpush.bf16.msra.mxu2 %v2091_v7  ;;  %v1697_v32 = vor.u32 %v2031_v30, %v1694_v31  ;;  %v2030_v34 = vld [vmem:[%s3357_s0 + $0x34] sm:$0xf0]  ;;  %v2033_v36 = vld [vmem:[%s3357_s0 + $0x54] sm:$0xf]  ;;  %v1702_v37 = vld [vmem:[%s3357_s0 + $0x58] sm:$0xf0] }
  0x10   :  { %v1685_v35 = vor.u32 %v2030_v34, %v1684_v33  ;;  %v1705_v38 = vor.u32 %v2033_v36, %v1702_v37  ;;  %v1692_v39 = vld [vmem:[%s3357_s0 + $0x40] sm:$0xf]  ;;  %v2032_v40 = vld [vmem:[%s3357_s0 + $0x44] sm:$0xf0]  ;;  %v2035_v42 = vld [vmem:[%s3357_s0 + $0x64] sm:$0xf] }
  0x11   :  { %v1693_v41 = vor.u32 %v2032_v40, %v1692_v39  ;;  %v1710_v43 = vld [vmem:[%s3357_s0 + $0x68] sm:$0xf0]  ;;  %v1700_v45 = vld [vmem:[%s3357_s0 + $0x50] sm:$0xf]  ;;  %v2034_v46 = vld [vmem:[%s3357_s0 + $0x54] sm:$0xf0] }
  0x12   :  { %562 = vmatpush.bf16.msra.mxu0 %v2090_v8  ;;  %v1713_v44 = vor.u32 %v2035_v42, %v1710_v43  ;;  %v1701_v47 = vor.u32 %v2034_v46, %v1700_v45  ;;  %v2037_v48 = vld [vmem:[%s3357_s0 + $0x74] sm:$0xf]  ;;  %v1718_v49 = vld [vmem:[%s3357_s0 + $0x78] sm:$0xf0]  ;;  %v1836_v51 = vld [vmem:[%s3357_s0 + $0x160] sm:$0xf] }
  0x13   :  { %2110 = vmatpush.bf16.msra.mxu2 %v2090_v8  ;;  %v1721_v50 = vor.u32 %v2037_v48, %v1718_v49  ;;  %v2068_v52 = vld [vmem:[%s3357_s0 + $0x164] sm:$0xf0]  ;;  %v1708_v54 = vld [vmem:[%s3357_s0 + $0x60] sm:$0xf]  ;;  %v2039_v57 = vld [vmem:[%s3357_s0 + $0x84] sm:$0xf] }
  0x14   :  { %v1837_v53 = vor.u32 %v2068_v52, %v1836_v51  ;;  %v2036_v55 = vld [vmem:[%s3357_s0 + $0x64] sm:$0xf0]  ;;  %v1726_v58 = vld [vmem:[%s3357_s0 + $0x88] sm:$0xf0]  ;;  %v1844_v61 = vld [vmem:[%s3357_s0 + $0x170] sm:$0xf] }
  0x15   :  { %1951 = vmatmul.msk.bf16.gmra.mxu1 %vm461_vm0, %v1673_v11  ;;  %v1709_v56 = vor.u32 %v2036_v55, %v1708_v54  ;;  %v1729_v59 = vor.u32 %v2039_v57, %v1726_v58  ;;  %v2070_v62 = vld [vmem:[%s3357_s0 + $0x174] sm:$0xf0]  ;;  %v1716_v1 = vld [vmem:[%s3357_s0 + $0x70] sm:$0xf]  ;;  %v2041_v4 = vld [vmem:[%s3357_s0 + $0x94] sm:$0xf] }
  0x16   :  { %563 = vmatpush.bf16.msra.mxu0 %v2089_v12  ;;  %v1845_v63 = vor.u32 %v2070_v62, %v1844_v61  ;;  %v2038_v2 = vld [vmem:[%s3357_s0 + $0x74] sm:$0xf0]  ;;  %v1734_v5 = vld [vmem:[%s3357_s0 + $0x98] sm:$0xf0]  ;;  %v1852_v8 = vld [vmem:[%s3357_s0 + $0x180] sm:$0xf] }
  0x17   :  { %2111 = vmatpush.bf16.msra.mxu2 %v2089_v12  ;;  %v1717_v3 = vor.u32 %v2038_v2, %v1716_v1  ;;  %v1737_v6 = vor.u32 %v2041_v4, %v1734_v5  ;;  %v2072_v9 = vld [vmem:[%s3357_s0 + $0x184] sm:$0xf0]  ;;  %v2071_v10 = vld [vmem:[%s3357_s0 + $0x184] sm:$0xf]  ;;  %v1854_v12 = vld [vmem:[%s3357_s0 + $0x188] sm:$0xf0] }
  0x18   :  { %v1853_v11 = vor.u32 %v2072_v9, %v1852_v8  ;;  %v1724_v15 = vld [vmem:[%s3357_s0 + $0x80] sm:$0xf]  ;;  %v2040_v16 = vld [vmem:[%s3357_s0 + $0x84] sm:$0xf0]  ;;  %v2043_v19 = vld [vmem:[%s3357_s0 + $0xa4] sm:$0xf] }
  0x19   :  { %v2074_v27 = vld [vmem:[%s3357_s0 + $0x194] sm:$0xf0]  ;;  %v2073_v28 = vld [vmem:[%s3357_s0 + $0x194] sm:$0xf]  ;;  %v1862_v30 = vld [vmem:[%s3357_s0 + $0x198] sm:$0xf0] }
  0x1a   :  { %564 = vmatpush.bf16.msra.mxu0 %v2088_v13  ;;  %v1865_v31 = vor.u32 %v2073_v28, %v1862_v30  ;;  %v1732_v33 = vld [vmem:[%s3357_s0 + $0x90] sm:$0xf]  ;;  %v2042_v34 = vld [vmem:[%s3357_s0 + $0x94] sm:$0xf0]  ;;  %v2045_v37 = vld [vmem:[%s3357_s0 + $0xb4] sm:$0xf] }
  0x1b   :  { %2112 = vmatpush.bf16.msra.mxu2 %v2088_v13  ;;  %v1857_v13 = vor.u32 %v2071_v10, %v1854_v12  ;;  %v2076_v45 = vld [vmem:[%s3357_s0 + $0x1a4] sm:$0xf0]  ;;  %v2075_v46 = vld [vmem:[%s3357_s0 + $0x1a4] sm:$0xf]  ;;  %v1870_v48 = vld [vmem:[%s3357_s0 + $0x1a8] sm:$0xf0] }
  0x1c   :  { %v1873_v49 = vor.u32 %v2075_v46, %v1870_v48  ;;  %v1740_v51 = vld [vmem:[%s3357_s0 + $0xa0] sm:$0xf]  ;;  %v2044_v52 = vld [vmem:[%s3357_s0 + $0xa4] sm:$0xf0]  ;;  %v2047_v55 = vld [vmem:[%s3357_s0 + $0xc4] sm:$0xf] }
  0x1d   :  { %1974 = vmatmul.msk.bf16.vlgmr.msra.gmra.mxu3 %vm461_vm0, %v1857_v13  ;;  %v1876_v62 = vld [vmem:[%s3357_s0 + $0x1b0] sm:$0xf]  ;;  %v1878_v2 = vld [vmem:[%s3357_s0 + $0x1b8] sm:$0xf0]  ;;  %v2049_v9 = vld [vmem:[%s3357_s0 + $0xd4] sm:$0xf] }
  0x1e   :  { %565 = vmatpush.bf16.msra.mxu0 %v2087_v14  ;;  %v1748_v5 = vld [vmem:[%s3357_s0 + $0xb0] sm:$0xf]  ;;  %v1766_v10 = vld [vmem:[%s3357_s0 + $0xd8] sm:$0xf0]  ;;  %v1774_v30 = vld [vmem:[%s3357_s0 + $0xe8] sm:$0xf0] }
  0x1f   :  { %2113 = vmatpush.bf16.msra.mxu2 %v2087_v14  ;;  %v1769_v12 = vor.u32 %v2049_v9, %v1766_v10  ;;  %v2053_v48 = vld [vmem:[%s3357_s0 + $0xf4] sm:$0xf]  ;;  %v1908_v10 = vld [vmem:[%s3357_s0 + $0x1f0] sm:$0xf]  ;;  %s1631_s1 = sshll.u32 %s2186_s26, 4  ;;  %s1633_s28 = sshll.u32 %s3366_s9, 4  ;;  %s1632_s1 = int_to_ptr.vmem [resolvable:$true] %s1631_s1  ;;  %s1634_s28 = int_to_ptr.hbm [resolvable:$true] %s1633_s28 }
  0x20   :  { %vm1624_vm14 = vcmask 0  }
  0x21   :  { %566 = vmatmul.bf16.vlgmr.msra.gmra.mxu0 %v1661_v17  ;;  %v1725_v17 = vor.u32 %v2040_v16, %v1724_v15  ;;  %v1884_v16 = vld [vmem:[%s3357_s0 + $0x1c0] sm:$0xf] }
  0x22   :  { %676 = vmatmul.bf16.vlgmr.msra.gmra.mxu2 %v1837_v53  ;;  %v1741_v53 = vor.u32 %v2044_v52, %v1740_v51 }
  0x25   :  { %1952 = vmatmul.msk.bf16.gmra.mxu1 %vm461_vm0, %v1681_v20  ;;  %v1742_v20 = vld [vmem:[%s3357_s0 + $0xa8] sm:$0xf0] }
  0x26   :  { %v1745_v22 = vor.u32 %v2043_v19, %v1742_v20  ;;  %v1886_v20 = vld [vmem:[%s3357_s0 + $0x1c8] sm:$0xf0] }
  0x2d   :  { %1975 = vmatmul.msk.bf16.gmra.mxu3 %vm461_vm0, %v1865_v31 }
  0x31   :  { %571 = vmatmul.bf16.gmra.mxu0 %v1669_v23 }
  0x32   :  { %681 = vmatmul.bf16.gmra.mxu2 %v1845_v63  ;;  %v2078_v63 = vld [vmem:[%s3357_s0 + $0x1b4] sm:$0xf0] }
  0x33   :  { %v1877_v1 = vor.u32 %v2078_v63, %v1876_v62  ;;  %v1772_v62 = vld [vmem:[%s3357_s0 + $0xe0] sm:$0xf]  ;;  %v2052_v63 = vld [vmem:[%s3357_s0 + $0xe4] sm:$0xf0] }
  0x35   :  { %1953 = vmatmul.msk.bf16.gmra.mxu1 %vm461_vm0, %v1689_v26  ;;  %v1860_v26 = vld [vmem:[%s3357_s0 + $0x190] sm:$0xf] }
  0x3d   :  { %1976 = vmatmul.msk.bf16.gmra.mxu3 %vm461_vm0, %v1873_v49  ;;  %v1782_v49 = vld [vmem:[%s3357_s0 + $0xf8] sm:$0xf0] }
  0x41   :  { %576 = vmatmul.bf16.gmra.mxu0 %v1677_v29  ;;  %v1861_v29 = vor.u32 %v2074_v27, %v1860_v26  ;;  %v2048_v26 = vld [vmem:[%s3357_s0 + $0xc4] sm:$0xf0] }
  0x42   :  { %686 = vmatmul.bf16.gmra.mxu2 %v1853_v11 }
  0x45   :  { %1954 = vmatmul.msk.bf16.gmra.mxu1 %vm461_vm0, %v1697_v32 }
  0x51   :  { %581 = vmatmul.bf16.gmra.mxu0 %v1685_v35  ;;  %v1733_v35 = vor.u32 %v2042_v34, %v1732_v33 }
  0x52   :  { %691 = vmatmul.bf16.gmra.mxu2 %v1861_v29  ;;  %v2051_v29 = vld [vmem:[%s3357_s0 + $0xe4] sm:$0xf] }
  0x55   :  { %1955 = vmatmul.msk.bf16.gmra.mxu1 %vm461_vm0, %v1705_v38  ;;  %v1750_v38 = vld [vmem:[%s3357_s0 + $0xb8] sm:$0xf0] }
  0x56   :  { %v1753_v40 = vor.u32 %v2045_v37, %v1750_v38  ;;  %v2081_v37 = vld [vmem:[%s3357_s0 + $0x1d4] sm:$0xf] }
  0x61   :  { %586 = vmatmul.bf16.gmra.mxu0 %v1693_v41 }
  0x65   :  { %1956 = vmatmul.msk.bf16.gmra.mxu1 %vm461_vm0, %v1713_v44  ;;  %v1868_v44 = vld [vmem:[%s3357_s0 + $0x1a0] sm:$0xf] }
  0x71   :  { %591 = vmatmul.bf16.gmra.mxu0 %v1701_v47  ;;  %v1869_v47 = vor.u32 %v2076_v45, %v1868_v44  ;;  %v1764_v44 = vld [vmem:[%s3357_s0 + $0xd0] sm:$0xf]  ;;  %v2050_v45 = vld [vmem:[%s3357_s0 + $0xd4] sm:$0xf0] }
  0x72   :  { %v1765_v46 = vor.u32 %v2050_v45, %v1764_v44  ;;  %v2056_v44 = vld [vmem:[%s3357_s0 + $0x104] sm:$0xf0] }
  0x73   :  { %696 = vmatmul.bf16.gmra.mxu2 %v1869_v47 }
  0x75   :  { %1957 = vmatmul.msk.bf16.gmra.mxu1 %vm461_vm0, %v1721_v50 }
  0x81   :  { %596 = vmatmul.bf16.gmra.mxu0 %v1709_v56  ;;  %v1758_v56 = vld [vmem:[%s3357_s0 + $0xc8] sm:$0xf0] }
  0x82   :  { %v736_v60 = vpop.f32.mrf.mxu1  ;;  %v1761_v58 = vor.u32 %v2047_v55, %v1758_v56  ;;  %v2083_v55 = vld [vmem:[%s3357_s0 + $0x1e4] sm:$0xf] }
  0x83   :  { %701 = vmatmul.bf16.gmra.mxu2 %v1877_v1  ;;  %v1773_v1 = vor.u32 %v2052_v63, %v1772_v62 }
  0x85   :  { %1958 = vmatmul.msk.bf16.gmra.mxu1 %vm461_vm0, %v1729_v59 }
  0x8a   :  { %v738_v0 = vpop.f32.mrf.mxu1 }
  0x91   :  { %601 = vmatmul.bf16.gmra.mxu0 %v1717_v3 }
  0x92   :  { %v741_v7 = vpop.f32.mrf.mxu1 }
  0x95   :  { %1959 = vmatmul.msk.bf16.gmra.mxu1 %vm461_vm0, %v1737_v6  ;;  %v2046_v6 = vld [vmem:[%s3357_s0 + $0xb4] sm:$0xf0] }
  0x9a   :  { %v743_v14 = vpop.f32.mrf.mxu1 }
  0x9e   :  { %v567_v18 = vpop.f32.mrf.mxu0 }
  0x9f   :  { %v2424_v21 = vadd.f32 %v736_v60, %v567_v18  ;;  %v2079_v18 = vld [vmem:[%s3357_s0 + $0x1c4] sm:$0xf] }
  0xa1   :  { %3412 = vst [vmem:[#allocation8_spill] sm:$0xff] %v2424_v21  ;;  %606 = vmatmul.bf16.gmra.mxu0 %v1725_v17  ;;  %v2080_v17 = vld [vmem:[%s3357_s0 + $0x1c4] sm:$0xf0] }
  0xa2   :  { %v746_v23 = vpop.f32.mrf.mxu1  ;;  %v1885_v19 = vor.u32 %v2080_v17, %v1884_v16  ;;  %v1910_v17 = vld [vmem:[%s3357_s0 + $0x1f8] sm:$0xf0] }
  0xa4   :  { %706 = vmatmul.bf16.gmra.mxu2 %v1885_v19 }
  0xa5   :  { %1960 = vmatmul.msk.bf16.gmra.mxu1 %vm461_vm0, %v1745_v22  ;;  %v1889_v22 = vor.u32 %v2079_v18, %v1886_v20  ;;  %v1780_v20 = vld [vmem:[%s3357_s0 + $0xf0] sm:$0xf] }
  0xa6   :  { %v569_v24 = vpop.f32.mrf.mxu0 }
  0xa7   :  { %v2427_v25 = vadd.f32 %v738_v0, %v569_v24  ;;  %v2077_v0 = vld [vmem:[%s3357_s0 + $0x1b4] sm:$0xf]  ;;  %v1756_v24 = vld [vmem:[%s3357_s0 + $0xc0] sm:$0xf] }
  0xa8   :  { %v1881_v3 = vor.u32 %v2077_v0, %v1878_v2  ;;  %v1757_v27 = vor.u32 %v2048_v26, %v1756_v24  ;;  %v2606_v0 = vpop.f32.mrf.mxu2 }
  0xa9   :  { %3413 = vst [vmem:[#allocation9_spill] sm:$0xff] %v2427_v25 }
  0xaa   :  { %v748_v32 = vpop.f32.mrf.mxu1  ;;  %1977 = vmatmul.msk.bf16.gmra.mxu3 %vm461_vm0, %v1881_v3  ;;  %v2055_v3 = vld [vmem:[%s3357_s0 + $0x104] sm:$0xf] }
  0xae   :  { %v572_v36 = vpop.f32.mrf.mxu0 }
  0xaf   :  { %v2454_v39 = vadd.f32 %v741_v7, %v572_v36  ;;  %v1749_v7 = vor.u32 %v2046_v6, %v1748_v5  ;;  %v2082_v36 = vld [vmem:[%s3357_s0 + $0x1d4] sm:$0xf0]  ;;  %v1790_v5 = vld [vmem:[%s3357_s0 + $0x108] sm:$0xf0] }
  0xb0   :  { %v1793_v6 = vor.u32 %v2055_v3, %v1790_v5  ;;  %v2061_v3 = vld [vmem:[%s3357_s0 + $0x134] sm:$0xf]  ;;  %v1814_v5 = vld [vmem:[%s3357_s0 + $0x138] sm:$0xf0] }
  0xb1   :  { %3414 = vst [vmem:[#allocation10_spill] sm:$0xff] %v2454_v39  ;;  %611 = vmatmul.bf16.gmra.mxu0 %v1733_v35  ;;  %v1892_v35 = vld [vmem:[%s3357_s0 + $0x1d0] sm:$0xf] }
  0xb2   :  { %v751_v41 = vpop.f32.mrf.mxu1  ;;  %v1893_v38 = vor.u32 %v2082_v36, %v1892_v35 }
  0xb4   :  { %711 = vmatmul.bf16.gmra.mxu2 %v1893_v38 }
  0xb5   :  { %1961 = vmatmul.msk.bf16.gmra.mxu1 %vm461_vm0, %v1753_v40  ;;  %v1894_v40 = vld [vmem:[%s3357_s0 + $0x1d8] sm:$0xf0] }
  0xb6   :  { %v574_v42 = vpop.f32.mrf.mxu0 }
  0xb7   :  { %v2457_v43 = vadd.f32 %v743_v14, %v574_v42 }
  0xb9   :  { %3415 = vst [vmem:[#allocation11_spill] sm:$0xff] %v2457_v43 }
  0xba   :  { %v753_v50 = vpop.f32.mrf.mxu1  ;;  %1978 = vmatmul.msk.bf16.gmra.mxu3 %vm461_vm0, %v1889_v22  ;;  %v2054_v22 = vld [vmem:[%s3357_s0 + $0xf4] sm:$0xf0] }
  0xbb   :  { %v1781_v24 = vor.u32 %v2054_v22, %v1780_v20  ;;  %v1804_v22 = vld [vmem:[%s3357_s0 + $0x120] sm:$0xf] }
  0xbe   :  { %v577_v54 = vpop.f32.mrf.mxu0 }
  0xbf   :  { %v2484_v57 = vadd.f32 %v746_v23, %v577_v54  ;;  %v2084_v54 = vld [vmem:[%s3357_s0 + $0x1e4] sm:$0xf0] }
  0xc1   :  { %3416 = vst [vmem:[#allocation12_spill] sm:$0xff] %v2484_v57  ;;  %616 = vmatmul.bf16.gmra.mxu0 %v1741_v53  ;;  %v1900_v53 = vld [vmem:[%s3357_s0 + $0x1e0] sm:$0xf] }
  0xc2   :  { %v756_v59 = vpop.f32.mrf.mxu1  ;;  %v1901_v56 = vor.u32 %v2084_v54, %v1900_v53  ;;  %v2674_v53 = vpop.f32.mrf.mxu3 }
  0xc4   :  { %716 = vmatmul.bf16.gmra.mxu2 %v1901_v56 }
  0xc5   :  { %1962 = vmatmul.msk.bf16.gmra.mxu1 %vm461_vm0, %v1761_v58  ;;  %v1902_v58 = vld [vmem:[%s3357_s0 + $0x1e8] sm:$0xf0] }
  0xc6   :  { %v579_v60 = vpop.f32.mrf.mxu0 }
  0xc7   :  { %v2487_v61 = vadd.f32 %v748_v32, %v579_v60  ;;  %v1777_v32 = vor.u32 %v2051_v29, %v1774_v30  ;;  %v1798_v29 = vld [vmem:[%s3357_s0 + $0x118] sm:$0xf0] }
  0xc9   :  { %3417 = vst [vmem:[#allocation13_spill] sm:$0xff] %v2487_v61 }
  0xca   :  { %v2501_v4 = vpop.f32.mrf.mxu1 }
  0xce   :  { %v582_v8 = vpop.f32.mrf.mxu0 }
  0xcf   :  { %v2516_v11 = vadd.f32 %v751_v41, %v582_v8  ;;  %v1897_v41 = vor.u32 %v2081_v37, %v1894_v40  ;;  %v2614_v8 = vpop.f32.mrf.mxu2 }
  0xd1   :  { %3418 = vst [vmem:[#allocation14_spill] sm:$0xff] %v2516_v11  ;;  %621 = vmatmul.bf16.gmra.mxu0 %v1749_v7  ;;  %1979 = vmatmul.msk.bf16.gmra.mxu3 %vm461_vm0, %v1897_v41  ;;  %v1788_v41 = vld [vmem:[%s3357_s0 + $0x100] sm:$0xf] }
  0xd2   :  { %v2518_v13 = vpop.f32.mrf.mxu1 }
  0xd5   :  { %1963 = vmatmul.msk.bf16.gmra.mxu1 %vm461_vm0, %v1769_v12  ;;  %v2086_v12 = vld [vmem:[%s3357_s0 + $0x1f4] sm:$0xf0] }
  0xd6   :  { %v584_v14 = vpop.f32.mrf.mxu0  ;;  %v1909_v16 = vor.u32 %v2086_v12, %v1908_v10  ;;  %v1817_v10 = vor.u32 %v2061_v3, %v1814_v5 }
  0xd7   :  { %v2521_v15 = vadd.f32 %v753_v50, %v584_v14  ;;  %v1785_v50 = vor.u32 %v2053_v48, %v1782_v49  ;;  %v2085_v14 = vld [vmem:[%s3357_s0 + $0x1f4] sm:$0xf]  ;;  %v2636_v26 = vpop.f32.mrf.mxu2  ;;  %v1789_v48 = vor.u32 %v2056_v44, %v1788_v41 }
  0xd8   :  { %v1913_v18 = vor.u32 %v2085_v14, %v1910_v17  ;;  %721 = vmatmul.bf16.gmra.mxu2 %v1909_v16 }
  0xd9   :  { %3419 = vst [vmem:[#allocation15_spill] sm:$0xff] %v2521_v15 }
  0xda   :  { %v2535_v23 = vpop.f32.mrf.mxu1 }
  0xde   :  { %v587_v28 = vpop.f32.mrf.mxu0 }
  0xdf   :  { %v2550_v31 = vadd.f32 %v756_v59, %v587_v28  ;;  %v1905_v59 = vor.u32 %v2083_v55, %v1902_v58  ;;  %v2057_v28 = vld [vmem:[%s3357_s0 + $0x114] sm:$0xf]  ;;  %v2645_v35 = vpop.f32.mrf.mxu2 }
  0xe0   :  { %v1801_v30 = vor.u32 %v2057_v28, %v1798_v29 }
  0xe1   :  { %3420 = vst [vmem:[#allocation16_spill] sm:$0xff] %v2550_v31  ;;  %626 = vmatmul.bf16.gmra.mxu0 %v1757_v27  ;;  %1980 = vmatmul.msk.bf16.gmra.mxu3 %vm461_vm0, %v1905_v59 }
  0xe2   :  { %v2552_v33 = vpop.f32.mrf.mxu1 }
  0xe5   :  { %1964 = vmatmul.msk.bf16.gmra.mxu1 %vm461_vm0, %v1777_v32 }
  0xe6   :  { %v2555_v34 = vpop.f32.mrf.mxu0 }
  0xe7   :  { %v2666_v49 = vpop.f32.mrf.mxu2  ;;  %v2689_v59 = vadd.f32 %v2501_v4, %v2555_v34  ;;  %v1796_v4 = vld [vmem:[%s3357_s0 + $0x110] sm:$0xf]  ;;  %v2058_v34 = vld [vmem:[%s3357_s0 + $0x114] sm:$0xf0] }
  0xe8   :  { %v1797_v63 = vor.u32 %v2058_v34, %v1796_v4 }
  0xea   :  { %v2569_v42 = vpop.f32.mrf.mxu1 }
  0xee   :  { %v2578_v47 = vpop.f32.mrf.mxu0 }
  0xef   :  { %v2684_v55 = vadd.f32 %v2518_v13, %v2578_v47 }
  0xf1   :  { %631 = vmatmul.bf16.gmra.mxu0 %v1765_v46  ;;  %1981 = vmatmul.msk.bf16.gmra.mxu3 %vm461_vm0, %v1913_v18 }
  0xf2   :  { %v771_v51 = vpop.f32.mrf.mxu1 }
  0xf5   :  { %1965 = vmatmul.msk.bf16.gmra.mxu1 %vm461_vm0, %v1785_v50 }
  0xf6   :  { %v594_v52 = vpop.f32.mrf.mxu0 }
  0xf7   :  { %v2677_v54 = vadd.f32 %v2535_v23, %v594_v52  ;;  %v689_v23 = vpop.f32.mrf.mxu2 }
  0xfa   :  { %v773_v60 = vpop.f32.mrf.mxu1 }
  0xfe   :  { %v597_v2 = vpop.f32.mrf.mxu0 }
  0xff   :  { %v2663_v46 = vadd.f32 %v2552_v33, %v597_v2 }
 0x101   :  { %636 = vmatmul.bf16.gmra.mxu0 %v1773_v1  ;;  %v692_v1 = vpop.f32.mrf.mxu2 }
 0x102   :  { %v776_v7 = vpop.f32.mrf.mxu1 }
 0x105   :  { %1966 = vmatmul.msk.bf16.gmra.mxu1 %vm461_vm0, %v1793_v6 }
 0x106   :  { %v599_v9 = vpop.f32.mrf.mxu0 }
 0x107   :  { %v2659_v45 = vadd.f32 %v2569_v42, %v599_v9  ;;  %v1806_v42 = vld [vmem:[%s3357_s0 + $0x128] sm:$0xf0] }
 0x109   :  { %v694_v14 = vpop.f32.mrf.mxu2 }
 0x10a   :  { %v778_v19 = vpop.f32.mrf.mxu1 }
 0x10e   :  { %v602_v27 = vpop.f32.mrf.mxu0 }
 0x10f   :  { %v2649_v38 = vadd.f32 %v771_v51, %v602_v27  ;;  %v2059_v51 = vld [vmem:[%s3357_s0 + $0x124] sm:$0xf] }
 0x110   :  { %v1809_v56 = vor.u32 %v2059_v51, %v1806_v42 }
 0x111   :  { %641 = vmatmul.bf16.gmra.mxu0 %v1781_v24  ;;  %v2060_v24 = vld [vmem:[%s3357_s0 + $0x124] sm:$0xf0]  ;;  %v697_v28 = vpop.f32.mrf.mxu2 }
 0x112   :  { %v781_v32 = vpop.f32.mrf.mxu1  ;;  %v1805_v27 = vor.u32 %v2060_v24, %v1804_v22 }
 0x115   :  { %1967 = vmatmul.msk.bf16.gmra.mxu1 %vm461_vm0, %v1801_v30  ;;  %v2063_v30 = vld [vmem:[%s3357_s0 + $0x144] sm:$0xf] }
 0x116   :  { %v604_v36 = vpop.f32.mrf.mxu0 }
 0x117   :  { %v2647_v37 = vadd.f32 %v773_v60, %v604_v36  ;;  %v858_v60 = vpop.f32.mrf.mxu3 }
 0x118   :  { %v2697_v47 = vadd.f32 %v858_v60, %v689_v23  ;;  %v2062_v60 = vld [vmem:[%s3357_s0 + $0x134] sm:$0xf0] }
 0x119   :  { %896 = vmatpush.msrb.mxu2 %v2647_v37 }
 0x11a   :  { %v783_v40 = vpop.f32.mrf.mxu1  ;;  %3422 = vst [vmem:[#allocation18_spill] sm:$0xff] %v2697_v47 }
 0x11b   :  { %897 = vmatpush.msrb.mxu2 %v2649_v38 }
 0x11d   :  { %898 = vmatpush.msrb.mxu2 %v2659_v45 }
 0x11e   :  { %v607_v50 = vpop.f32.mrf.mxu0 }
 0x11f   :  { %v2679_v33 = vadd.f32 %v776_v7, %v607_v50  ;;  %899 = vmatpush.msrb.mxu2 %v2663_v46  ;;  %v861_v6 = vpop.f32.mrf.mxu3  ;;  %v699_v50 = vpop.f32.mrf.mxu2 }
 0x120   :  { %v2717_v9 = vadd.f32 %v861_v6, %v692_v1  ;;  %v1830_v1 = vld [vmem:[%s3357_s0 + $0x158] sm:$0xf0] }
 0x121   :  { %646 = vmatmul.bf16.gmra.mxu0 %v1789_v48  ;;  %900 = vmatpush.msrb.mxu2 %v2677_v54 }
 0x122   :  { %v786_v58 = vpop.f32.mrf.mxu1  ;;  %3423 = vst [vmem:[#allocation19_spill] sm:$0xff] %v2717_v9 }
 0x123   :  { %901 = vmatpush.msrb.mxu2 %v2684_v55 }
 0x125   :  { %1968 = vmatmul.msk.bf16.gmra.mxu1 %vm461_vm0, %v1809_v56  ;;  %902 = vmatpush.msrb.mxu2 %v2689_v59 }
 0x126   :  { %v609_v52 = vpop.f32.mrf.mxu0 }
 0x127   :  { %v2694_v13 = vadd.f32 %v778_v19, %v609_v52  ;;  %903 = vmatpush.msrb.mxu2 %v2550_v31  ;;  %v863_v17 = vpop.f32.mrf.mxu3  ;;  %v702_v34 = vpop.f32.mrf.mxu2 }
 0x128   :  { %v2726_v19 = vadd.f32 %v863_v17, %v694_v14 }
 0x129   :  { %3421 = vst [vmem:[#allocation17_spill] sm:$0xff] %v2694_v13  ;;  %904 = vmatpush.msrb.mxu2 %v2521_v15 }
 0x12a   :  { %v788_v62 = vpop.f32.mrf.mxu1  ;;  %3425 = vst [vmem:[#allocation21_spill] sm:$0xff] %v2726_v19 }
 0x12b   :  { %905 = vmatpush.msrb.mxu2 %v2516_v11 }
 0x12d   :  { %906 = vmatpush.msrb.mxu2 %v2487_v61 }
 0x12e   :  { %v612_v2 = vpop.f32.mrf.mxu0 }
 0x12f   :  { %v2714_v7 = vadd.f32 %v781_v32, %v612_v2  ;;  %907 = vmatpush.msrb.mxu2 %v2484_v57  ;;  %v1822_v32 = vld [vmem:[%s3357_s0 + $0x148] sm:$0xf0]  ;;  %v866_v36 = vpop.f32.mrf.mxu3  ;;  %v704_v14 = vpop.f32.mrf.mxu2 }
 0x130   :  { %v2742_v41 = vadd.f32 %v866_v36, %v697_v28  ;;  %v1825_v44 = vor.u32 %v2063_v30, %v1822_v32  ;;  %v2064_v28 = vld [vmem:[%s3357_s0 + $0x144] sm:$0xf0]  ;;  %v2067_v36 = vld [vmem:[%s3357_s0 + $0x164] sm:$0xf] }
 0x131   :  { %651 = vmatmul.bf16.gmra.mxu0 %v1797_v63  ;;  %908 = vmatpush.msrb.mxu2 %v2457_v43 }
 0x132   :  { %v791_v12 = vpop.f32.mrf.mxu1  ;;  %3427 = vst [vmem:[#allocation23_spill] sm:$0xff] %v2742_v41 }
 0x133   :  { %909 = vmatpush.msrb.mxu2 %v2454_v39 }
 0x135   :  { %1969 = vmatmul.msk.bf16.gmra.mxu1 %vm461_vm0, %v1817_v10  ;;  %910 = vmatpush.msrb.mxu2 %v2427_v25 }
 0x136   :  { %v614_v16 = vpop.f32.mrf.mxu0 }
 0x137   :  { %v2723_v18 = vadd.f32 %v783_v40, %v614_v16  ;;  %911 = vmatpush.msrb.mxu2 %v2424_v21  ;;  %v868_v42 = vpop.f32.mrf.mxu3  ;;  %v707_v30 = vpop.f32.mrf.mxu2 }
 0x138   :  { %v2747_v23 = vadd.f32 %v868_v42, %v699_v50 }
 0x139   :  { %3424 = vst [vmem:[#allocation20_spill] sm:$0xff] %v2723_v18 }
 0x13a   :  { %v793_v20 = vpop.f32.mrf.mxu1  ;;  %3429 = vst [vmem:[#allocation25_spill] sm:$0xff] %v2747_v23 }
 0x13e   :  { %v617_v29 = vpop.f32.mrf.mxu0 }
 0x13f   :  { %v2740_v40 = vadd.f32 %v786_v58, %v617_v29  ;;  %v1812_v58 = vld [vmem:[%s3357_s0 + $0x130] sm:$0xf]  ;;  %v871_v2 = vpop.f32.mrf.mxu3 }
 0x140   :  { %v1813_v4 = vor.u32 %v2062_v60, %v1812_v58  ;;  %v2765_v5 = vadd.f32 %v871_v2, %v702_v34  ;;  %v1828_v34 = vld [vmem:[%s3357_s0 + $0x150] sm:$0xf]  ;;  %v1846_v2 = vld [vmem:[%s3357_s0 + $0x178] sm:$0xf0] }
 0x141   :  { %3426 = vst [vmem:[#allocation22_spill] sm:$0xff] %v2740_v40  ;;  %656 = vmatmul.bf16.gmra.mxu0 %v1805_v27 }
 0x142   :  { %v796_v48 = vpop.f32.mrf.mxu1  ;;  %3430 = vst [vmem:[#allocation26_spill] sm:$0xff] %v2765_v5 }
 0x145   :  { %1970 = vmatmul.msk.bf16.gmra.mxu1 %vm461_vm0, %v1825_v44 }
 0x146   :  { %v619_v51 = vpop.f32.mrf.mxu0 }
 0x147   :  { %v2745_v56 = vadd.f32 %v788_v62, %v619_v51  ;;  %v2065_v62 = vld [vmem:[%s3357_s0 + $0x154] sm:$0xf]  ;;  %v873_v17 = vpop.f32.mrf.mxu3 }
 0x148   :  { %v1833_v6 = vor.u32 %v2065_v62, %v1830_v1  ;;  %v2772_v24 = vadd.f32 %v873_v17, %v704_v14  ;;  %v2069_v1 = vld [vmem:[%s3357_s0 + $0x174] sm:$0xf] }
 0x149   :  { %3428 = vst [vmem:[#allocation24_spill] sm:$0xff] %v2745_v56 }
 0x14a   :  { %v2749_v52 = vpop.f32.mrf.mxu1  ;;  %3431 = vst [vmem:[#allocation27_spill] sm:$0xff] %v2772_v24 }
 0x14e   :  { %v622_v63 = vpop.f32.mrf.mxu0 }
 0x14f   :  { %v2763_v3 = vadd.f32 %v791_v12, %v622_v63  ;;  %v1820_v12 = vld [vmem:[%s3357_s0 + $0x140] sm:$0xf]  ;;  %v876_v44 = vpop.f32.mrf.mxu3  ;;  %v2066_v63 = vld [vmem:[%s3357_s0 + $0x154] sm:$0xf0] }
 0x150   :  { %v1821_v29 = vor.u32 %v2064_v28, %v1820_v12  ;;  %v2788_v51 = vadd.f32 %v876_v44, %v707_v30  ;;  %v1829_v62 = vor.u32 %v2066_v63, %v1828_v34 }
 0x151   :  { %661 = vmatmul.bf16.gmra.mxu0 %v1813_v4 }
 0x152   :  { %v2767_v10 = vpop.f32.mrf.mxu1 }
 0x155   :  { %1971 = vmatmul.msk.bf16.gmra.mxu1 %vm461_vm0, %v1833_v6  ;;  %v1849_v6 = vor.u32 %v2069_v1, %v1846_v2 }
 0x156   :  { %v624_v16 = vpop.f32.mrf.mxu0 }
 0x157   :  { %v2770_v22 = vadd.f32 %v793_v20, %v624_v16  ;;  %v1838_v20 = vld [vmem:[%s3357_s0 + $0x168] sm:$0xf0]  ;;  %v2804_v16 = vpop.f32.mrf.mxu2  ;;  %v2806_v17 = vpop.f32.mrf.mxu3 }
 0x158   :  { %v1841_v42 = vor.u32 %v2067_v36, %v1838_v20 }
 0x15a   :  { %v803_v27 = vpop.f32.mrf.mxu1 }
 0x15e   :  { %v627_v32 = vpop.f32.mrf.mxu0 }
 0x15f   :  { %v2786_v50 = vadd.f32 %v796_v48, %v627_v32  ;;  %v2808_v30 = vpop.f32.mrf.mxu2  ;;  %v2810_v32 = vpop.f32.mrf.mxu3 }
 0x161   :  { %666 = vmatmul.bf16.gmra.mxu0 %v1821_v29 }
 0x162   :  { %v806_v58 = vpop.f32.mrf.mxu1 }
 0x165   :  { %1972 = vmatmul.msk.bf16.gmra.mxu1 %vm461_vm0, %v1841_v42 }
 0x166   :  { %v629_v60 = vpop.f32.mrf.mxu0 }
 0x167   :  { %v714_v44 = vpop.f32.mrf.mxu2  ;;  %v883_v42 = vpop.f32.mrf.mxu3 }
 0x16a   :  { %v808_v4 = vpop.f32.mrf.mxu1 }
 0x16e   :  { %v632_v48 = vpop.f32.mrf.mxu0 }
 0x16f   :  { %v717_v1 = vpop.f32.mrf.mxu2  ;;  %v886_v2 = vpop.f32.mrf.mxu3 }
 0x171   :  { %671 = vmatmul.bf16.gmra.mxu0 %v1829_v62 }
 0x172   :  { %v811_v14 = vpop.f32.mrf.mxu1 }
 0x175   :  { %1973 = vmatmul.msk.bf16.gmra.mxu1 %vm461_vm0, %v1849_v6 }
 0x176   :  { %v634_v12 = vpop.f32.mrf.mxu0 }
 0x177   :  { %v719_v61 = vpop.f32.mrf.mxu2  ;;  %v888_v11 = vpop.f32.mrf.mxu3  ;;  %v2823_v31 = vadd.f32 %v803_v27, %v634_v12 }
 0x17a   :  { %v813_v28 = vpop.f32.mrf.mxu1 }
 0x17e   :  { %v637_v29 = vpop.f32.mrf.mxu0 }
 0x17f   :  { %v2820_v57 = vadd.f32 %v806_v58, %v637_v29  ;;  %v2833_v58 = vadd.f32 %v2749_v52, %v629_v60  ;;  %v891_v12 = vpop.f32.mrf.mxu3 }
 0x181   :  { %3435 = vst [vmem:[#allocation31_spill] sm:$0xff] %v2833_v58 }
 0x182   :  { %v816_v36 = vpop.f32.mrf.mxu1 }
 0x186   :  { %v639_v20 = vpop.f32.mrf.mxu0 }
 0x187   :  { %v2817_v43 = vadd.f32 %v808_v4, %v639_v20 }
 0x18a   :  { %v818_v34 = vpop.f32.mrf.mxu1 }
 0x18e   :  { %v642_v63 = vpop.f32.mrf.mxu0 }
 0x18f   :  { %v2814_v25 = vadd.f32 %v811_v14, %v642_v63  ;;  %v2829_v14 = vadd.f32 %v2767_v10, %v632_v48 }
 0x191   :  { %3432 = vst [vmem:[#allocation28_spill] sm:$0xff] %v2814_v25 }
 0x192   :  { %v821_v62 = vpop.f32.mrf.mxu1  ;;  %3434 = vst [vmem:[#allocation30_spill] sm:$0xff] %v2829_v14 }
 0x196   :  { %v644_v6 = vpop.f32.mrf.mxu0 }
 0x197   :  { %v2812_v21 = vadd.f32 %v813_v28, %v644_v6 }
 0x199   :  { %916 = vmatpush.msrb.mxu3 %v2812_v21 }
 0x19a   :  { %v823_v39 = vpop.f32.mrf.mxu1 }
 0x19b   :  { %917 = vmatpush.msrb.mxu3 %v2814_v25 }
 0x19d   :  { %918 = vmatpush.msrb.mxu3 %v2817_v43 }
 0x19e   :  { %v647_v15 = vpop.f32.mrf.mxu0 }
 0x19f   :  { %v2825_v28 = vadd.f32 %v816_v36, %v647_v15  ;;  %919 = vmatpush.msrb.mxu3 %v2820_v57  ;;  %v722_v15 = vpop.f32.mrf.mxu2  ;;  %v893_v36 = vpop.f32.mrf.mxu3 }
 0x1a0   :  { %v2855_v63 = vadd.f32 %v891_v12, %v722_v15  ;;  %v2870_v15 = vadd.f32 %v883_v42, %v714_v44  ;;  %v1007_v42 = vmul.f32 %v2812_v21, %v2812_v21 }
 0x1a1   :  { %3433 = vst [vmem:[#allocation29_spill] sm:$0xff] %v2825_v28  ;;  %920 = vmatpush.msrb.mxu3 %v2823_v31 }
 0x1a2   :  { %v826_v4 = vpop.f32.mrf.mxu1 }
 0x1a3   :  { %921 = vmatpush.msrb.mxu3 %v2829_v14 }
 0x1a5   :  { %922 = vmatpush.msrb.mxu3 %v2833_v58 }
 0x1a6   :  { %v649_v29 = vpop.f32.mrf.mxu0 }
 0x1a7   :  { %v2837_v27 = vadd.f32 %v818_v34, %v649_v29  ;;  %923 = vmatpush.msrb.mxu3 %v2786_v50  ;;  %v724_v48 = vpop.f32.mrf.mxu2 }
 0x1a8   :  { %v2852_v34 = vadd.f32 %v893_v36, %v724_v48  ;;  %v2865_v48 = vadd.f32 %v886_v2, %v717_v1  ;;  %v2882_v1 = vadd.f32 %v2806_v17, %v2804_v16 }
 0x1a9   :  { %3436 = vst [vmem:[#allocation32_spill] sm:$0xff] %v2837_v27  ;;  %924 = vmatpush.msrb.mxu3 %v2770_v22 }
 0x1aa   :  { %v2841_v10 = vpop.f32.mrf.mxu1  ;;  %3438 = vst [vmem:[#allocation34_spill] sm:$0xff] %v2852_v34 }
 0x1ab   :  { %925 = vmatpush.msrb.mxu3 %v2763_v3 }
 0x1ad   :  { %926 = vmatpush.msrb.mxu3 %v2745_v56 }
 0x1ae   :  { %v652_v52 = vpop.f32.mrf.mxu0 }
 0x1af   :  { %v2845_v60 = vadd.f32 %v821_v62, %v652_v52  ;;  %927 = vmatpush.msrb.mxu3 %v2740_v40  ;;  %v3386_v62 = vmov 1.0   ;;  %v2861_v52 = vadd.f32 %v888_v11, %v719_v61 }
 0x1b0   :  { %912 = vmatmul.f32.vlgmr.msrb.gmra.mxu2 %v3386_v62 }
 0x1b1   :  { %3437 = vst [vmem:[#allocation33_spill] sm:$0xff] %v2845_v60  ;;  %928 = vmatpush.msrb.mxu3 %v2723_v18 }
 0x1b2   :  { %v2849_v20 = vpop.f32.mrf.mxu1 }
 0x1b3   :  { %929 = vmatpush.msrb.mxu3 %v2714_v7 }
 0x1b5   :  { %930 = vmatpush.msrb.mxu3 %v2694_v13 }
 0x1b6   :  { %v654_v6 = vpop.f32.mrf.mxu0 }
 0x1b7   :  { %v2857_v29 = vadd.f32 %v823_v39, %v654_v6  ;;  %931 = vmatpush.msrb.mxu3 %v2679_v33  ;;  %v2875_v39 = vadd.f32 %v2810_v32, %v2808_v30  ;;  %v2906_v32 = vadd.f32 %v2674_v53, %v2666_v49  ;;  %v1005_v49 = vmul.f32 %v2817_v43, %v2817_v43 }
 0x1b8   :  { %932 = vmatmul.f32.vlgmr.msrb.gmra.mxu3 %v3386_v62  ;;  %v1004_v6 = vmul.f32 %v2820_v57, %v2820_v57 }
 0x1b9   :  { %3439 = vst [vmem:[#allocation35_spill] sm:$0xff] %v2857_v29  ;;  %956 = vmatpush.msra.mxu3 %v2852_v34 }
 0x1ba   :  { %v2867_v36 = vpop.f32.mrf.mxu1  ;;  %3441 = vst [vmem:[#allocation37_spill] sm:$0xff] %v2906_v32 }
 0x1bb   :  { %957 = vmatpush.msra.mxu3 %v2855_v63 }
 0x1bd   :  { %958 = vmatpush.msra.mxu3 %v2861_v52 }
 0x1be   :  { %v657_v61 = vpop.f32.mrf.mxu0 }
 0x1bf   :  { %959 = vmatpush.msra.mxu3 %v2865_v48  ;;  %v2878_v11 = vadd.f32 %v826_v4, %v657_v61  ;;  %v1006_v4 = vmul.f32 %v2814_v25, %v2814_v25  ;;  %v1003_v61 = vmul.f32 %v2823_v31, %v2823_v31 }
 0x1c1   :  { %3440 = vst [vmem:[#allocation36_spill] sm:$0xff] %v2878_v11  ;;  %960 = vmatpush.msra.mxu3 %v2870_v15 }
 0x1c2   :  { %v2885_v2 = vpop.f32.mrf.mxu1 }
 0x1c3   :  { %961 = vmatpush.msra.mxu3 %v2875_v39 }
 0x1c5   :  { %962 = vmatpush.msra.mxu3 %v2882_v1 }
 0x1c6   :  { %v2889_v44 = vpop.f32.mrf.mxu0 }
 0x1c7   :  { %963 = vmatpush.msra.mxu3 %v2788_v51 }
 0x1c9   :  { %964 = vmatpush.msra.mxu3 %v2772_v24 }
 0x1ca   :  { %v2893_v30 = vpop.f32.mrf.mxu1 }
 0x1cb   :  { %965 = vmatpush.msra.mxu3 %v2765_v5 }
 0x1cd   :  { %966 = vmatpush.msra.mxu3 %v2747_v23 }
 0x1ce   :  { %v2897_v16 = vpop.f32.mrf.mxu0 }
 0x1cf   :  { %967 = vmatpush.msra.mxu3 %v2742_v41 }
 0x1d1   :  { %968 = vmatpush.msra.mxu3 %v2726_v19 }
 0x1d2   :  { %v2901_v17 = vpop.f32.mrf.mxu1 }
 0x1d3   :  { %969 = vmatpush.msra.mxu3 %v2717_v9 }
 0x1d5   :  { %970 = vmatpush.msra.mxu3 %v2697_v47 }
 0x1d6   :  { %v2914_v12 = vpop.f32.mrf.mxu0 }
 0x1d7   :  { %971 = vmatpush.msra.mxu3 %v2906_v32 }
 0x1d8   :  { %972 = vmatmul.f32.vlgmr.msra.gmra.mxu3 %v3386_v62 }
 0x1d9   :  { %1060 = vmatpush.msrb.mxu3 %v1007_v42  ;;  %v1002_v42 = vmul.f32 %v2829_v14, %v2829_v14 }
 0x1da   :  { %v843_v53 = vpop.f32.mrf.mxu1 }
 0x1db   :  { %1061 = vmatpush.msrb.mxu3 %v1006_v4  ;;  %v1001_v4 = vmul.f32 %v2833_v58, %v2833_v58 }
 0x1dd   :  { %1062 = vmatpush.msrb.mxu3 %v1005_v49  ;;  %v1000_v49 = vmul.f32 %v2786_v50, %v2786_v50 }
 0x1de   :  { %v667_v62 = vpop.f32.mrf.mxu0 }
 0x1df   :  { %1063 = vmatpush.msrb.mxu3 %v1004_v6  ;;  %v999_v6 = vmul.f32 %v2770_v22, %v2770_v22 }
 0x1e1   :  { %1064 = vmatpush.msrb.mxu3 %v1003_v61  ;;  %v998_v61 = vmul.f32 %v2763_v3, %v2763_v3 }
 0x1e2   :  { %v846_v25 = vpop.f32.mrf.mxu1 }
 0x1e3   :  { %1065 = vmatpush.msrb.mxu3 %v1002_v42  ;;  %v997_v42 = vmul.f32 %v2745_v56, %v2745_v56  ;;  %v1039_v56 = vmul.f32 %v2852_v34, %v2852_v34 }
 0x1e5   :  { %1066 = vmatpush.msrb.mxu3 %v1001_v4  ;;  %v996_v4 = vmul.f32 %v2740_v40, %v2740_v40  ;;  %v992_v40 = vmul.f32 %v2679_v33, %v2679_v33 }
 0x1e6   :  { %v669_v58 = vpop.f32.mrf.mxu0 }
 0x1e7   :  { %1067 = vmatpush.msrb.mxu3 %v1000_v49  ;;  %v995_v49 = vmul.f32 %v2723_v18, %v2723_v18  ;;  %v3442_v18 = vmov 1.0  }
 0x1e9   :  { %1068 = vmatpush.msrb.mxu3 %v999_v6  ;;  %v994_v6 = vmul.f32 %v2714_v7, %v2714_v7 }
 0x1ea   :  { %v848_v14 = vpop.f32.mrf.mxu1 }
 0x1eb   :  { %1069 = vmatpush.msrb.mxu3 %v998_v61  ;;  %v993_v61 = vmul.f32 %v2694_v13, %v2694_v13 }
 0x1ed   :  { %1070 = vmatpush.msrb.mxu3 %v997_v42 }
 0x1ef   :  { %1071 = vmatpush.msrb.mxu3 %v996_v4  ;;  %v1038_v4 = vmul.f32 %v2855_v63, %v2855_v63 }
 0x1f1   :  { %1072 = vmatpush.msrb.mxu3 %v995_v49  ;;  %v672_v49 = vpop.f32.mrf.mxu0 }
 0x1f2   :  { %v851_v42 = vpop.f32.mrf.mxu1 }
 0x1f3   :  { %1073 = vmatpush.msrb.mxu3 %v994_v6  ;;  %v1037_v6 = vmul.f32 %v2861_v52, %v2861_v52 }
 0x1f5   :  { %1074 = vmatpush.msrb.mxu3 %v993_v61  ;;  %v1036_v61 = vmul.f32 %v2865_v48, %v2865_v48 }
 0x1f7   :  { %1075 = vmatpush.msrb.mxu3 %v992_v40  ;;  %v1035_v40 = vmul.f32 %v2870_v15, %v2870_v15 }
 0x1f8   :  { %1076 = vmatmul.f32.vlgmr.msrb.gmra.mxu3 %v3442_v18 }
 0x1f9   :  { %1100 = vmatpush.msra.mxu3 %v1039_v56  ;;  %v2960_v56 = vadd.f32 %v851_v42, %v2636_v26  ;;  %v1032_v26 = vmul.f32 %v2788_v51, %v2788_v51 }
 0x1fa   :  { %v853_v13 = vpop.f32.mrf.mxu1 }
 0x1fb   :  { %1101 = vmatpush.msra.mxu3 %v1038_v4  ;;  %v2955_v34 = vadd.f32 %v853_v13, %v2645_v35  ;;  %v1034_v4 = vmul.f32 %v2875_v39, %v2875_v39  ;;  %v674_v35 = vpop.f32.mrf.mxu0  ;;  %v1033_v13 = vmul.f32 %v2882_v1, %v2882_v1 }
 0x1fc   :  { %v2977_v42 = vadd.f32 %v843_v53, %v674_v35  ;;  %v1029_v53 = vmul.f32 %v2747_v23, %v2747_v23  ;;  %v986_v35 = vmul.f32 %v2684_v55, %v2684_v55 }
 0x1fd   :  { %1102 = vmatpush.msra.mxu3 %v1037_v6  ;;  %936 = vmatpush.msra.mxu2 %v2955_v34  ;;  %v2966_v6 = vadd.f32 %v848_v14, %v2614_v8  ;;  %v1031_v8 = vmul.f32 %v2772_v24, %v2772_v24  ;;  %v2983_v14 = vadd.f32 %v2901_v17, %v672_v49 }
 0x1fe   :  { %v1028_v17 = vmul.f32 %v2742_v41, %v2742_v41  ;;  %v3002_v49 = vadd.f32 %v2867_v36, %v2914_v12  ;;  %v3016_v36 = vadd.f32 %v2841_v10, %v2889_v44  ;;  %v991_v10 = vmul.f32 %v2647_v37, %v2647_v37 }
 0x1ff   :  { %1103 = vmatpush.msra.mxu3 %v1036_v61  ;;  %937 = vmatpush.msra.mxu2 %v2960_v56  ;;  %v2972_v61 = vadd.f32 %v846_v25, %v2606_v0  ;;  %v1030_v25 = vmul.f32 %v2765_v5, %v2765_v5  ;;  %v2989_v0 = vadd.f32 %v2893_v30, %v669_v58 }
 0x200   :  { %3443 = vst [vmem:[#allocation38_spill] sm:$0xff] %v3002_v49  ;;  %v1027_v58 = vmul.f32 %v2726_v19, %v2726_v19  ;;  %v1025_v30 = vmul.f32 %v2697_v47, %v2697_v47  ;;  %v990_v44 = vmul.f32 %v2649_v38, %v2649_v38  ;;  %v988_v12 = vmul.f32 %v2663_v46, %v2663_v46 }
 0x201   :  { %1104 = vmatpush.msra.mxu3 %v1035_v40  ;;  %938 = vmatpush.msra.mxu2 %v2966_v6  ;;  %v2995_v40 = vadd.f32 %v2885_v2, %v667_v62  ;;  %v3009_v62 = vadd.f32 %v2849_v20, %v2897_v16  ;;  %v1026_v2 = vmul.f32 %v2717_v9, %v2717_v9 }
 0x202   :  { %3445 = vst [vmem:[#allocation40_spill] sm:$0xff] %v3016_v36  ;;  %v1024_v20 = vmul.f32 %v2906_v32, %v2906_v32  ;;  %v989_v16 = vmul.f32 %v2659_v45, %v2659_v45 }
 0x203   :  { %1105 = vmatpush.msra.mxu3 %v1034_v4  ;;  %939 = vmatpush.msra.mxu2 %v2972_v61  ;;  %3444 = vst [vmem:[#allocation39_spill] sm:$0xff] %v3009_v62  ;;  %v987_v4 = vmul.f32 %v2677_v54, %v2677_v54 }
 0x205   :  { %1106 = vmatpush.msra.mxu3 %v1033_v13  ;;  %940 = vmatpush.msra.mxu2 %v2977_v42  ;;  %v985_v13 = vmul.f32 %v2689_v59, %v2689_v59 }
 0x207   :  { %1107 = vmatpush.msra.mxu3 %v1032_v26  ;;  %941 = vmatpush.msra.mxu2 %v2983_v14  ;;  %v3446_v26 = vld [vmem:[#allocation16_spill] sm:$0xff] }
 0x209   :  { %1108 = vmatpush.msra.mxu3 %v1031_v8  ;;  %942 = vmatpush.msra.mxu2 %v2989_v0  ;;  %v984_v8 = vmul.f32 %v3446_v26, %v3446_v26 }
 0x20b   :  { %1109 = vmatpush.msra.mxu3 %v1030_v25  ;;  %943 = vmatpush.msra.mxu2 %v2995_v40  ;;  %v3447_v25 = vld [vmem:[#allocation15_spill] sm:$0xff] }
 0x20d   :  { %1110 = vmatpush.msra.mxu3 %v1029_v53  ;;  %944 = vmatpush.msra.mxu2 %v3002_v49  ;;  %v983_v53 = vmul.f32 %v3447_v25, %v3447_v25 }
 0x20f   :  { %1111 = vmatpush.msra.mxu3 %v1028_v17  ;;  %945 = vmatpush.msra.mxu2 %v3009_v62  ;;  %v3448_v17 = vld [vmem:[#allocation14_spill] sm:$0xff] }
 0x211   :  { %1112 = vmatpush.msra.mxu3 %v1027_v58  ;;  %946 = vmatpush.msra.mxu2 %v3016_v36  ;;  %v982_v58 = vmul.f32 %v3448_v17, %v3448_v17 }
 0x213   :  { %1113 = vmatpush.msra.mxu3 %v1026_v2  ;;  %947 = vmatpush.msra.mxu2 %v2878_v11  ;;  %v3449_v2 = vld [vmem:[#allocation13_spill] sm:$0xff] }
 0x215   :  { %1114 = vmatpush.msra.mxu3 %v1025_v30  ;;  %948 = vmatpush.msra.mxu2 %v2857_v29  ;;  %v981_v30 = vmul.f32 %v3449_v2, %v3449_v2 }
 0x217   :  { %1115 = vmatpush.msra.mxu3 %v1024_v20  ;;  %949 = vmatpush.msra.mxu2 %v2845_v60  ;;  %v3450_v20 = vld [vmem:[#allocation12_spill] sm:$0xff] }
 0x218   :  { %1116 = vmatmul.f32.vlgmr.msra.gmra.mxu3 %v3442_v18 }
 0x219   :  { %950 = vmatpush.msra.mxu2 %v2837_v27 }
 0x21b   :  { %951 = vmatpush.msra.mxu2 %v2825_v28 }
 0x21c   :  { %952 = vmatmul.f32.vlgmr.msra.gmra.mxu2 %v3442_v18 }
 0x21d   :  { %1040 = vmatpush.msrb.mxu2 %v991_v10  ;;  %v980_v10 = vmul.f32 %v3450_v20, %v3450_v20 }
 0x21f   :  { %1041 = vmatpush.msrb.mxu2 %v990_v44  ;;  %v3451_v44 = vld [vmem:[#allocation11_spill] sm:$0xff] }
 0x221   :  { %1042 = vmatpush.msrb.mxu2 %v989_v16  ;;  %v979_v16 = vmul.f32 %v3451_v44, %v3451_v44 }
 0x223   :  { %1043 = vmatpush.msrb.mxu2 %v988_v12  ;;  %v3452_v12 = vld [vmem:[#allocation10_spill] sm:$0xff] }
 0x225   :  { %1044 = vmatpush.msrb.mxu2 %v987_v4  ;;  %v978_v4 = vmul.f32 %v3452_v12, %v3452_v12 }
 0x227   :  { %1045 = vmatpush.msrb.mxu2 %v986_v35  ;;  %v3453_v35 = vld [vmem:[#allocation9_spill] sm:$0xff] }
 0x229   :  { %1046 = vmatpush.msrb.mxu2 %v985_v13  ;;  %v977_v13 = vmul.f32 %v3453_v35, %v3453_v35 }
 0x22b   :  { %1047 = vmatpush.msrb.mxu2 %v984_v8  ;;  %v3454_v8 = vld [vmem:[#allocation8_spill] sm:$0xff] }
 0x22d   :  { %1048 = vmatpush.msrb.mxu2 %v983_v53  ;;  %v976_v53 = vmul.f32 %v3454_v8, %v3454_v8 }
 0x22f   :  { %1049 = vmatpush.msrb.mxu2 %v982_v58  ;;  %v1023_v58 = vmul.f32 %v2955_v34, %v2955_v34 }
 0x231   :  { %1050 = vmatpush.msrb.mxu2 %v981_v30  ;;  %v1022_v30 = vmul.f32 %v2960_v56, %v2960_v56 }
 0x233   :  { %1051 = vmatpush.msrb.mxu2 %v980_v10  ;;  %v1021_v10 = vmul.f32 %v2966_v6, %v2966_v6 }
 0x235   :  { %1052 = vmatpush.msrb.mxu2 %v979_v16  ;;  %v1020_v16 = vmul.f32 %v2972_v61, %v2972_v61 }
 0x237   :  { %1053 = vmatpush.msrb.mxu2 %v978_v4  ;;  %v1019_v4 = vmul.f32 %v2977_v42, %v2977_v42 }
 0x239   :  { %1054 = vmatpush.msrb.mxu2 %v977_v13  ;;  %v1018_v13 = vmul.f32 %v2983_v14, %v2983_v14 }
 0x23b   :  { %1055 = vmatpush.msrb.mxu2 %v976_v53  ;;  %v1017_v53 = vmul.f32 %v2989_v0, %v2989_v0 }
 0x23c   :  { %1056 = vmatmul.f32.vlgmr.msrb.gmra.mxu2 %v3442_v18 }
 0x23d   :  { %1080 = vmatpush.msra.mxu2 %v1023_v58  ;;  %v1016_v58 = vmul.f32 %v2995_v40, %v2995_v40 }
 0x23f   :  { %1081 = vmatpush.msra.mxu2 %v1022_v30  ;;  %v1015_v30 = vmul.f32 %v3002_v49, %v3002_v49 }
 0x241   :  { %1082 = vmatpush.msra.mxu2 %v1021_v10  ;;  %v1014_v10 = vmul.f32 %v3009_v62, %v3009_v62 }
 0x243   :  { %1083 = vmatpush.msra.mxu2 %v1020_v16  ;;  %v1013_v16 = vmul.f32 %v3016_v36, %v3016_v36 }
 0x245   :  { %1084 = vmatpush.msra.mxu2 %v1019_v4  ;;  %v1012_v4 = vmul.f32 %v2878_v11, %v2878_v11 }
 0x247   :  { %1085 = vmatpush.msra.mxu2 %v1018_v13  ;;  %v1011_v13 = vmul.f32 %v2857_v29, %v2857_v29 }
 0x249   :  { %1086 = vmatpush.msra.mxu2 %v1017_v53  ;;  %v1010_v53 = vmul.f32 %v2845_v60, %v2845_v60 }
 0x24b   :  { %1087 = vmatpush.msra.mxu2 %v1016_v58  ;;  %v1009_v58 = vmul.f32 %v2837_v27, %v2837_v27 }
 0x24d   :  { %1088 = vmatpush.msra.mxu2 %v1015_v30  ;;  %v1008_v30 = vmul.f32 %v2825_v28, %v2825_v28 }
 0x24f   :  { %1089 = vmatpush.msra.mxu2 %v1014_v10  ;;  %v913_v10 = vpop.f32.mrf.mxu2 }
 0x251   :  { %1090 = vmatpush.msra.mxu2 %v1013_v16  ;;  %v933_v16 = vpop.f32.mrf.mxu3 }
 0x253   :  { %1091 = vmatpush.msra.mxu2 %v1012_v4 }
 0x255   :  { %1092 = vmatpush.msra.mxu2 %v1011_v13  ;;  %v934_v13 = vadd.f32 %v933_v16, %v913_v10 }
 0x257   :  { %1093 = vmatpush.msra.mxu2 %v1010_v53 }
 0x259   :  { %1094 = vmatpush.msra.mxu2 %v1009_v58 }
 0x25b   :  { %1095 = vmatpush.msra.mxu2 %v1008_v30  ;;  %v973_v32 = vpop.f32.mrf.mxu3 }
 0x25c   :  { %1096 = vmatmul.f32.vlgmr.msra.gmra.mxu2 %v3442_v18 }
 0x27b   :  { %v1077_v9 = vpop.f32.mrf.mxu3 }
 0x29b   :  { %v1117_v41 = vpop.f32.mrf.mxu3 }
 0x29f   :  { %v953_v4 = vpop.f32.mrf.mxu2 }
 0x2a0   :  { %v954_v19 = vadd.f32 %v953_v4, %v934_v13 }
 0x2a2   :  { %v974_v60 = vadd.f32 %v973_v32, %v954_v19 }
 0x2a4   :  { %v1120_v58 = vmul.f32 0.001953125, %v974_v60 }
 0x2a6   :  { %v1122_v23 = vmul.f32 %v1120_v58, %v1120_v58  ;;  %v3097_v16 = vperm.slane %v1120_v58, 0 }
 0x2a8   :  { %v1141_v19 = vsub.f32 %v2647_v37, %v3097_v16  ;;  %v1139_v60 = vsub.f32 %v2659_v45, %v3097_v16  ;;  %v1153_v4 = vsub.f32 %v2823_v31, %v3097_v16  ;;  %v1136_v58 = vsub.f32 %v2684_v55, %v3097_v16 }
 0x2bf   :  { %v1057_v47 = vpop.f32.mrf.mxu2 }
 0x2c0   :  { %v1078_v53 = vadd.f32 %v1077_v9, %v1057_v47 }
 0x2df   :  { %v1097_v29 = vpop.f32.mrf.mxu2 }
 0x2e0   :  { %v1098_v27 = vadd.f32 %v1097_v29, %v1078_v53 }
 0x2e2   :  { %v1118_v11 = vadd.f32 %v1117_v41, %v1098_v27  ;;  %v1157_v41 = vsub.f32 %v2812_v21, %v3097_v16  ;;  %v1138_v21 = vsub.f32 %v2663_v46, %v3097_v16 }
 0x2e4   :  { %v1121_v28 = vmul.f32 0.001953125, %v1118_v11  ;;  %v1154_v11 = vsub.f32 %v2820_v57, %v3097_v16 }
 0x2e6   :  { %v1123_v30 = vsub.f32 %v1121_v28, %v1122_v23  ;;  %v1140_v28 = vsub.f32 %v2649_v38, %v3097_v16 }
 0x2e8   :  { %v1124_v36 = vmax.f32 %v1123_v30, 0.0  ;;  %v3456_v30 = vld [vmem:[#allocation30_spill] sm:$0xff] }
 0x2ea   :  { %v1190_v18 = vadd.f32 1e-05, %v1124_v36  ;;  %v1137_v36 = vsub.f32 %v2677_v54, %v3097_v16 }
 0x2ec   :  { %2122 = vrsqrt.f32 %v1190_v18  ;;  %vm1197_vm2 = vweird.f32 %v1190_v18 }
 0x2f2   :  { %v2123_v5 = vpop.eup %2122 }
 0x2f3   :  { %v1192_v62 = vmul.f32 %v2123_v5, %v1190_v18  ;;  %vm1198_vm1 = vweird.f32 %v2123_v5  ;;  %v1152_v18 = vsub.f32 %v3456_v30, %v3097_v16  ;;  %v3459_v30 = vld [vmem:[#allocation22_spill] sm:$0xff] }
 0x2f4   :  { %vm1199_vm3 = vmor %vm1197_vm2, %vm1198_vm1 }
 0x2f5   :  { %v1193_v24 = vmul.f32 %v2123_v5, %v1192_v62 }
 0x2f7   :  { %v1194_v49 = vmul.f32 0.5, %v1193_v24  ;;  %v3455_v24 = vld [vmem:[#allocation28_spill] sm:$0xff] }
 0x2f8   :  { %v1156_v27 = vsub.f32 %v3455_v24, %v3097_v16 }
 0x2f9   :  { %v1195_v10 = vsub.f32 1.5, %v1194_v49 }
 0x2fb   :  { %v1196_v47 = vmul.f32 %v2123_v5, %v1195_v10 }
 0x2fd   :  { %v1200_v9 = vsel %vm1199_vm3, %v2123_v5, %v1196_v47  ;;  %v1155_v5 = vsub.f32 %v2817_v43, %v3097_v16 }
 0x2fe   :  { %v3103_v23 = vperm.slane %v1200_v9, 0  ;;  %v1135_v9 = vsub.f32 %v2689_v59, %v3097_v16 }
 0x300   :  { %v1233_v29 = vmul.f32 %v3103_v23, %v1157_v41  ;;  %v1217_v37 = vmul.f32 %v3103_v23, %v1141_v19  ;;  %v1216_v38 = vmul.f32 %v3103_v23, %v1140_v28  ;;  %v1232_v32 = vmul.f32 %v3103_v23, %v1156_v27  ;;  %v3457_v19 = vld [vmem:[#allocation31_spill] sm:$0xff] }
 0x301   :  { %v1215_v45 = vmul.f32 %v3103_v23, %v1139_v60  ;;  %v1231_v43 = vmul.f32 %v3103_v23, %v1155_v5  ;;  %v1214_v13 = vmul.f32 %v3103_v23, %v1138_v21  ;;  %v1230_v53 = vmul.f32 %v3103_v23, %v1154_v11 }
 0x302   :  { %v1281_v49 = vmax.f32 %v1217_v37, 0.0  ;;  %v1297_v62 = vmax.f32 %v1233_v29, 0.0  ;;  %v1280_v46 = vmax.f32 %v1216_v38, 0.0  ;;  %v1296_v57 = vmax.f32 %v1232_v32, 0.0 }
 0x303   :  { %v1279_v54 = vmax.f32 %v1215_v45, 0.0  ;;  %v1295_v10 = vmax.f32 %v1231_v43, 0.0  ;;  %v1213_v31 = vmul.f32 %v3103_v23, %v1137_v36  ;;  %v1229_v47 = vmul.f32 %v3103_v23, %v1153_v4 }
 0x304   :  { %1334 = vmatpush.msrb.mxu2 %v1281_v49  ;;  %1354 = vmatpush.msrb.mxu3 %v1297_v62  ;;  %v1151_v41 = vsub.f32 %v3457_v19, %v3097_v16  ;;  %v1278_v55 = vmax.f32 %v1214_v13, 0.0  ;;  %v1294_v28 = vmax.f32 %v1230_v53, 0.0  ;;  %v1212_v24 = vmul.f32 %v3103_v23, %v1136_v58 }
 0x305   :  { %v1228_v27 = vmul.f32 %v3103_v23, %v1152_v18  ;;  %v1134_v60 = vsub.f32 %v3446_v26, %v3097_v16  ;;  %v1150_v5 = vsub.f32 %v2786_v50, %v3097_v16  ;;  %v1277_v59 = vmax.f32 %v1213_v31, 0.0 }
 0x306   :  { %1335 = vmatpush.msrb.mxu2 %v1280_v46  ;;  %1355 = vmatpush.msrb.mxu3 %v1296_v57  ;;  %v1293_v29 = vmax.f32 %v1229_v47, 0.0  ;;  %v1211_v37 = vmul.f32 %v3103_v23, %v1135_v9  ;;  %v1227_v21 = vmul.f32 %v3103_v23, %v1151_v41  ;;  %v1133_v11 = vsub.f32 %v3447_v25, %v3097_v16  ;;  %v3458_v46 = vld [vmem:[#allocation24_spill] sm:$0xff] }
 0x307   :  { %v1149_v38 = vsub.f32 %v2770_v22, %v3097_v16  ;;  %v1276_v26 = vmax.f32 %v1212_v24, 0.0  ;;  %v1292_v32 = vmax.f32 %v1228_v27, 0.0  ;;  %v1210_v50 = vmul.f32 %v3103_v23, %v1134_v60  ;;  %v3460_v9 = vld [vmem:[#allocation20_spill] sm:$0xff] }
 0x308   :  { %1336 = vmatpush.msrb.mxu2 %v1279_v54  ;;  %1356 = vmatpush.msrb.mxu3 %v1295_v10  ;;  %v1226_v49 = vmul.f32 %v3103_v23, %v1150_v5  ;;  %v1132_v62 = vsub.f32 %v3448_v17, %v3097_v16  ;;  %v1148_v45 = vsub.f32 %v2763_v3, %v3097_v16  ;;  %v1275_v25 = vmax.f32 %v1211_v37, 0.0  ;;  %v3461_v37 = vld [vmem:[#allocation17_spill] sm:$0xff] }
 0x309   :  { %v1291_v43 = vmax.f32 %v1227_v21, 0.0  ;;  %v1209_v22 = vmul.f32 %v3103_v23, %v1133_v11  ;;  %v1225_v36 = vmul.f32 %v3103_v23, %v1149_v38  ;;  %v1131_v4 = vsub.f32 %v3449_v2, %v3097_v16 }
 0x30a   :  { %1337 = vmatpush.msrb.mxu2 %v1278_v55  ;;  %1357 = vmatpush.msrb.mxu3 %v1294_v28  ;;  %v1147_v57 = vsub.f32 %v3458_v46, %v3097_v16  ;;  %v1274_v17 = vmax.f32 %v1210_v50, 0.0  ;;  %v1290_v13 = vmax.f32 %v1226_v49, 0.0  ;;  %v1208_v3 = vmul.f32 %v3103_v23, %v1132_v62 }
 0x30b   :  { %v1224_v53 = vmul.f32 %v3103_v23, %v1148_v45  ;;  %v1130_v58 = vsub.f32 %v3450_v20, %v3097_v16  ;;  %v1146_v18 = vsub.f32 %v3459_v30, %v3097_v16  ;;  %v1273_v2 = vmax.f32 %v1209_v22, 0.0 }
 0x30c   :  { %1338 = vmatpush.msrb.mxu2 %v1277_v59  ;;  %1358 = vmatpush.msrb.mxu3 %v1293_v29  ;;  %v1289_v54 = vmax.f32 %v1225_v36, 0.0  ;;  %v1207_v10 = vmul.f32 %v3103_v23, %v1131_v4  ;;  %v1223_v31 = vmul.f32 %v3103_v23, %v1147_v57  ;;  %v1129_v47 = vsub.f32 %v3451_v44, %v3097_v16 }
 0x30d   :  { %v1145_v19 = vsub.f32 %v3460_v9, %v3097_v16  ;;  %v1272_v20 = vmax.f32 %v1208_v3, 0.0  ;;  %v1288_v41 = vmax.f32 %v1224_v53, 0.0  ;;  %v1206_v55 = vmul.f32 %v3103_v23, %v1130_v58 }
 0x30e   :  { %1339 = vmatpush.msrb.mxu2 %v1276_v26  ;;  %1359 = vmatpush.msrb.mxu3 %v1292_v32  ;;  %v1222_v28 = vmul.f32 %v3103_v23, %v1146_v18  ;;  %v1128_v24 = vsub.f32 %v3452_v12, %v3097_v16  ;;  %v1144_v27 = vsub.f32 %v2714_v7, %v3097_v16  ;;  %v1271_v44 = vmax.f32 %v1207_v10, 0.0 }
 0x30f   :  { %v1287_v60 = vmax.f32 %v1223_v31, 0.0  ;;  %v1205_v5 = vmul.f32 %v3103_v23, %v1129_v47  ;;  %v1221_v59 = vmul.f32 %v3103_v23, %v1145_v19  ;;  %v1127_v29 = vsub.f32 %v3453_v35, %v3097_v16  ;;  %v1330_v31 = vld [vmem:[%s3359_s2] sm:$0xff] }
 0x310   :  { %1340 = vmatpush.msrb.mxu2 %v1275_v25  ;;  %1360 = vmatpush.msrb.mxu3 %v1291_v43  ;;  %v1143_v21 = vsub.f32 %v3461_v37, %v3097_v16  ;;  %v1270_v12 = vmax.f32 %v1206_v55, 0.0  ;;  %v1286_v11 = vmax.f32 %v1222_v28, 0.0  ;;  %v1204_v7 = vmul.f32 %v3103_v23, %v1128_v24  ;;  %v3462_v25 = vld [vmem:[#allocation34_spill] sm:$0xff] }
 0x311   :  { %v1220_v38 = vmul.f32 %v3103_v23, %v1144_v27  ;;  %v1126_v26 = vsub.f32 %v3454_v8, %v3097_v16  ;;  %v1142_v32 = vsub.f32 %v2679_v33, %v3097_v16  ;;  %v1269_v35 = vmax.f32 %v1205_v5, 0.0 }
 0x312   :  { %1341 = vmatpush.msrb.mxu2 %v1274_v17  ;;  %1361 = vmatpush.msrb.mxu3 %v1290_v13  ;;  %v1285_v50 = vmax.f32 %v1221_v59, 0.0  ;;  %v1203_v49 = vmul.f32 %v3103_v23, %v1127_v29  ;;  %v1219_v62 = vmul.f32 %v3103_v23, %v1143_v21  ;;  %v1173_v45 = vsub.f32 %v2955_v34, %v3097_v16 }
 0x313   :  { %v1189_v43 = vsub.f32 %v3462_v25, %v3097_v16  ;;  %v1268_v8 = vmax.f32 %v1204_v7, 0.0  ;;  %v1284_v22 = vmax.f32 %v1220_v38, 0.0  ;;  %v1202_v33 = vmul.f32 %v3103_v23, %v1126_v26  ;;  %v3464_v38 = vld [vmem:[#allocation27_spill] sm:$0xff] }
 0x314   :  { %1342 = vmatpush.msrb.mxu2 %v1273_v2  ;;  %1362 = vmatpush.msrb.mxu3 %v1289_v54  ;;  %v1218_v36 = vmul.f32 %v3103_v23, %v1142_v32  ;;  %v1172_v4 = vsub.f32 %v2960_v56, %v3097_v16  ;;  %v1188_v46 = vsub.f32 %v2855_v63, %v3097_v16  ;;  %v1267_v17 = vmax.f32 %v1203_v49, 0.0 }
 0x315   :  { %v1249_v57 = vmul.f32 %v3103_v23, %v1173_v45  ;;  %v1265_v34 = vmul.f32 %v3103_v23, %v1189_v43  ;;  %v1283_v13 = vmax.f32 %v1219_v62, 0.0  ;;  %v1171_v3 = vsub.f32 %v2966_v6, %v3097_v16  ;;  %v3466_v62 = vld [vmem:[#allocation26_spill] sm:$0xff] }
 0x316   :  { %1343 = vmatpush.msrb.mxu2 %v1272_v20  ;;  %1363 = vmatpush.msrb.mxu3 %v1288_v41  ;;  %v1187_v53 = vsub.f32 %v2861_v52, %v3097_v16  ;;  %v1248_v58 = vmul.f32 %v3103_v23, %v1172_v4  ;;  %v1264_v56 = vmul.f32 %v3103_v23, %v1188_v46  ;;  %v1266_v18 = vmax.f32 %v1202_v33, 0.0  ;;  %v3467_v33 = vld [vmem:[#allocation40_spill] sm:$0xff]  ;;  %v3468_v4 = vld [vmem:[#allocation25_spill] sm:$0xff] }
 0x317   :  { %v1170_v63 = vsub.f32 %v2972_v61, %v3097_v16  ;;  %v1186_v30 = vsub.f32 %v2865_v48, %v3097_v16  ;;  %v1282_v2 = vmax.f32 %v1218_v36, 0.0  ;;  %v1313_v54 = vmax.f32 %v1249_v57, 0.0  ;;  %v1331_v61 = vld [vmem:[%s3359_s2 + $0x8] sm:$0xff] }
 0x318   :  { %1344 = vmatpush.msrb.mxu2 %v1271_v44  ;;  %1364 = vmatpush.msrb.mxu3 %v1287_v60  ;;  %v1329_v10 = vmax.f32 %v1265_v34, 0.0  ;;  %v1247_v6 = vmul.f32 %v3103_v23, %v1171_v3  ;;  %v1263_v52 = vmul.f32 %v3103_v23, %v1187_v53  ;;  %v1169_v48 = vsub.f32 %v2977_v42, %v3097_v16  ;;  %v3469_v3 = vld [vmem:[#allocation36_spill] sm:$0xff] }
 0x319   :  { %v1185_v47 = vsub.f32 %v2870_v15, %v3097_v16  ;;  %v1312_v9 = vmax.f32 %v1248_v58, 0.0  ;;  %v1328_v19 = vmax.f32 %v1264_v56, 0.0  ;;  %v1246_v20 = vmul.f32 %v3103_v23, %v1170_v63  ;;  %v3470_v58 = vld [vmem:[#allocation23_spill] sm:$0xff] }
 0x31a   :  { %1345 = vmatpush.msrb.mxu2 %v1270_v12  ;;  %1365 = vmatpush.msrb.mxu3 %v1286_v11  ;;  %v1262_v41 = vmul.f32 %v3103_v23, %v1186_v30  ;;  %v1168_v55 = vsub.f32 %v2983_v14, %v3097_v16  ;;  %v1184_v28 = vsub.f32 %v2875_v39, %v3097_v16  ;;  %v1311_v15 = vmax.f32 %v1247_v6, 0.0  ;;  %v3463_v11 = vld [vmem:[#allocation38_spill] sm:$0xff]  ;;  %v3472_v6 = vld [vmem:[#allocation21_spill] sm:$0xff] }
 0x31b   :  { %v1327_v42 = vmax.f32 %v1263_v52, 0.0  ;;  %v1245_v24 = vmul.f32 %v3103_v23, %v1169_v48  ;;  %v1261_v27 = vmul.f32 %v3103_v23, %v1185_v47  ;;  %v1167_v44 = vsub.f32 %v2989_v0, %v3097_v16 }
 0x31c   :  { %1346 = vmatpush.msrb.mxu2 %v1269_v35  ;;  %1366 = vmatpush.msrb.mxu3 %v1285_v50  ;;  %v1183_v60 = vsub.f32 %v2882_v1, %v3097_v16  ;;  %v1310_v14 = vmax.f32 %v1246_v20, 0.0  ;;  %v1326_v39 = vmax.f32 %v1262_v41, 0.0  ;;  %v1244_v5 = vmul.f32 %v3103_v23, %v1168_v55  ;;  %v3465_v50 = vld [vmem:[#allocation39_spill] sm:$0xff] }
 0x31d   :  { %v1260_v59 = vmul.f32 %v3103_v23, %v1184_v28  ;;  %v1166_v29 = vsub.f32 %v2995_v40, %v3097_v16  ;;  %v1182_v37 = vsub.f32 %v2788_v51, %v3097_v16  ;;  %v1309_v0 = vmax.f32 %v1245_v24, 0.0  ;;  %v3474_v20 = vld [vmem:[#allocation19_spill] sm:$0xff]  ;;  %v3475_v24 = vld [vmem:[#allocation32_spill] sm:$0xff] }
 0x31e   :  { %1347 = vmatpush.msrb.mxu2 %v1268_v8  ;;  %1367 = vmatpush.msrb.mxu3 %v1284_v22  ;;  %v1325_v21 = vmax.f32 %v1261_v27, 0.0  ;;  %v1243_v1 = vmul.f32 %v3103_v23, %v1167_v44  ;;  %v1259_v12 = vmul.f32 %v3103_v23, %v1183_v60  ;;  %v1165_v7 = vsub.f32 %v3463_v11, %v3097_v16  ;;  %v3476_v44 = vld [vmem:[#allocation18_spill] sm:$0xff] }
 0x31f   :  { %v1181_v26 = vsub.f32 %v3464_v38, %v3097_v16  ;;  %v1308_v40 = vmax.f32 %v1244_v5, 0.0  ;;  %v1324_v32 = vmax.f32 %v1260_v59, 0.0  ;;  %v1242_v51 = vmul.f32 %v3103_v23, %v1166_v29  ;;  %v3477_v29 = vld [vmem:[#allocation29_spill] sm:$0xff] }
 0x320   :  { %1348 = vmatpush.msrb.mxu2 %v1267_v17  ;;  %1368 = vmatpush.msrb.mxu3 %v1283_v13  ;;  %v1258_v35 = vmul.f32 %v3103_v23, %v1182_v37  ;;  %v1164_v49 = vsub.f32 %v3465_v50, %v3097_v16  ;;  %v1180_v45 = vsub.f32 %v3466_v62, %v3097_v16  ;;  %v1307_v25 = vmax.f32 %v1243_v1, 0.0  ;;  %v1333_v62 = vld [vmem:[%s3359_s2 + $0x18] sm:$0xff] }
 0x321   :  { %v1323_v43 = vmax.f32 %v1259_v12, 0.0  ;;  %v1241_v8 = vmul.f32 %v3103_v23, %v1165_v7  ;;  %v1257_v22 = vmul.f32 %v3103_v23, %v1181_v26  ;;  %v1163_v36 = vsub.f32 %v3467_v33, %v3097_v16  ;;  %v2101_v33 = vld [vmem:[%s3362_s5 + $0x18] sm:$0xff] }
 0x322   :  { %1349 = vmatpush.msrb.mxu2 %v1266_v18  ;;  %1369 = vmatpush.msrb.mxu3 %v1282_v2  ;;  %v1179_v46 = vsub.f32 %v3468_v4, %v3097_v16  ;;  %v1306_v57 = vmax.f32 %v1242_v51, 0.0  ;;  %v1322_v34 = vmax.f32 %v1258_v35, 0.0  ;;  %v1240_v17 = vmul.f32 %v3103_v23, %v1164_v49  ;;  %v1332_v49 = vld [vmem:[%s3359_s2 + $0x10] sm:$0xff] }
 0x323   :  { %1350 = vmatmul.f32.vlgmr.msrb.gmra.mxu2 %v1330_v31  ;;  %1370 = vmatmul.f32.vlgmr.msrb.gmra.mxu3 %v1331_v61  ;;  %v1256_v13 = vmul.f32 %v3103_v23, %v1180_v45  ;;  %v1162_v53 = vsub.f32 %v3469_v3, %v3097_v16  ;;  %v1178_v56 = vsub.f32 %v3470_v58, %v3097_v16  ;;  %v1305_v63 = vmax.f32 %v1241_v8, 0.0  ;;  %v2096_v45 = vld [vmem:[%s3360_s3] sm:$0xff]  ;;  %v2103_v8 = vld [vmem:[%s3362_s5 + $0x28] sm:$0xff] }
 0x324   :  { %1374 = vmatpush.msra.mxu2 %v1313_v54  ;;  %1394 = vmatpush.msra.mxu3 %v1329_v10  ;;  %v1321_v30 = vmax.f32 %v1257_v22, 0.0  ;;  %v1239_v18 = vmul.f32 %v3103_v23, %v1163_v36  ;;  %v1255_v2 = vmul.f32 %v3103_v23, %v1179_v46  ;;  %v3471_v54 = vld [vmem:[#allocation35_spill] sm:$0xff]  ;;  %v1177_v52 = vsub.f32 %v3472_v6, %v3097_v16  ;;  %v2100_v46 = vld [vmem:[%s3362_s5 + $0x10] sm:$0xff]  ;;  %v2121_v6 = vld [vmem:[%s3363_s6] ss:$0 sm:$0xff] }
 0x325   :  { %v1161_v10 = vsub.f32 %v3471_v54, %v3097_v16  ;;  %v1304_v31 = vmax.f32 %v1240_v17, 0.0  ;;  %v1320_v61 = vmax.f32 %v1256_v13, 0.0  ;;  %v1238_v48 = vmul.f32 %v3103_v23, %v1162_v53  ;;  %v2102_v22 = vld [vmem:[%s3362_s5 + $0x20] sm:$0xff]  ;;  %v2099_v58 = vld [vmem:[%s3362_s5 + $0x8] sm:$0xff] }
 0x326   :  { %1375 = vmatpush.msra.mxu2 %v1312_v9  ;;  %1395 = vmatpush.msra.mxu3 %v1328_v19  ;;  %v1254_v47 = vmul.f32 %v3103_v23, %v1178_v56  ;;  %v3473_v9 = vld [vmem:[#allocation33_spill] sm:$0xff]  ;;  %v1176_v41 = vsub.f32 %v3474_v20, %v3097_v16  ;;  %v1303_v55 = vmax.f32 %v1239_v18, 0.0  ;;  %v1319_v28 = vmax.f32 %v1255_v2, 0.0  ;;  %v2098_v56 = vld [vmem:[%s3362_s5] sm:$0xff] }
 0x327   :  { %v1160_v19 = vsub.f32 %v3473_v9, %v3097_v16  ;;  %v1159_v27 = vsub.f32 %v3475_v24, %v3097_v16  ;;  %v1175_v60 = vsub.f32 %v3476_v44, %v3097_v16  ;;  %v1158_v37 = vsub.f32 %v3477_v29, %v3097_v16 }
 0x328   :  { %1376 = vmatpush.msra.mxu2 %v1311_v15  ;;  %1396 = vmatpush.msra.mxu3 %v1327_v42  ;;  %v1237_v15 = vmul.f32 %v3103_v23, %v1161_v10  ;;  %v1253_v42 = vmul.f32 %v3103_v23, %v1177_v52  ;;  %v1252_v59 = vmul.f32 %v3103_v23, %v1176_v41 }
 0x329   :  { %v1236_v5 = vmul.f32 %v3103_v23, %v1160_v19  ;;  %v1235_v11 = vmul.f32 %v3103_v23, %v1159_v27  ;;  %v1251_v7 = vmul.f32 %v3103_v23, %v1175_v60 }
 0x32a   :  { %1377 = vmatpush.msra.mxu2 %v1310_v14  ;;  %1397 = vmatpush.msra.mxu3 %v1326_v39  ;;  %v1302_v14 = vmax.f32 %v1238_v48, 0.0  ;;  %v1318_v39 = vmax.f32 %v1254_v47, 0.0  ;;  %v1301_v1 = vmax.f32 %v1237_v15, 0.0  ;;  %v1317_v12 = vmax.f32 %v1253_v42, 0.0 }
 0x32b   :  { %v1300_v38 = vmax.f32 %v1236_v5, 0.0  ;;  %v1316_v26 = vmax.f32 %v1252_v59, 0.0  ;;  %v1299_v51 = vmax.f32 %v1235_v11, 0.0  ;;  %v1577_v59 = vld [vmem:[%s3364_s7] sm:$0xff]  ;;  %s2185_s7 = smov [#allocation4]  }
 0x32c   :  { %1378 = vmatpush.msra.mxu2 %v1309_v0  ;;  %1398 = vmatpush.msra.mxu3 %v1325_v21  ;;  %v3478_v0 = vld [vmem:[#allocation37_spill] sm:$0xff] }
 0x32d   :  { %v1174_v21 = vsub.f32 %v3478_v0, %v3097_v16  ;;  %v1315_v16 = vmax.f32 %v1251_v7, 0.0 }
 0x32e   :  { %1379 = vmatpush.msra.mxu2 %v1308_v40  ;;  %1399 = vmatpush.msra.mxu3 %v1324_v32  ;;  %v1234_v40 = vmul.f32 %v3103_v23, %v1158_v37 }
 0x32f   :  { %v1250_v32 = vmul.f32 %v3103_v23, %v1174_v21  ;;  %v2097_v23 = vld [vmem:[%s3360_s3 + $0x8] sm:$0xff]  ;;  %v1578_v21 = vld [vmem:[%s3365_s8] sm:$0xff]  ;;  %s1642_s8 = sshll.u32 %s2185_s7, 4  ;;  %s1643_s8 = int_to_ptr.vmem [resolvable:$true] %s1642_s8 }
 0x330   :  { %1380 = vmatpush.msra.mxu2 %v1307_v25  ;;  %1400 = vmatpush.msra.mxu3 %v1323_v43  ;;  %v1298_v35 = vmax.f32 %v1234_v40, 0.0  ;;  %v2105_v25 = vld [vmem:[%s3362_s5 + $0x38] sm:$0xff]  ;;  %v2104_v43 = vld [vmem:[%s3362_s5 + $0x30] sm:$0xff] }
 0x331   :  { %v1314_v50 = vmax.f32 %v1250_v32, 0.0 }
 0x332   :  { %1381 = vmatpush.msra.mxu2 %v1306_v57  ;;  %1401 = vmatpush.msra.mxu3 %v1322_v34 }
 0x334   :  { %1382 = vmatpush.msra.mxu2 %v1305_v63  ;;  %1402 = vmatpush.msra.mxu3 %v1321_v30  ;;  %v2120_v63 = vld [vmem:[%s3361_s4] ss:$0 sm:$0xff] }
 0x336   :  { %1383 = vmatpush.msra.mxu2 %v1304_v31  ;;  %1403 = vmatpush.msra.mxu3 %v1320_v61 }
 0x338   :  { %1384 = vmatpush.msra.mxu2 %v1303_v55  ;;  %1404 = vmatpush.msra.mxu3 %v1319_v28 }
 0x33a   :  { %1385 = vmatpush.msra.mxu2 %v1302_v14  ;;  %1405 = vmatpush.msra.mxu3 %v1318_v39 }
 0x33c   :  { %1386 = vmatpush.msra.mxu2 %v1301_v1  ;;  %1406 = vmatpush.msra.mxu3 %v1317_v12  ;;  %v1588_v1 = vsel %vm1572_vm8, %v1578_v21, 0.0 }
 0x33e   :  { %1387 = vmatpush.msra.mxu2 %v1300_v38  ;;  %1407 = vmatpush.msra.mxu3 %v1316_v26 }
 0x340   :  { %1388 = vmatpush.msra.mxu2 %v1299_v51  ;;  %1408 = vmatpush.msra.mxu3 %v1315_v16 }
 0x342   :  { %1389 = vmatpush.msra.mxu2 %v1298_v35  ;;  %1409 = vmatpush.msra.mxu3 %v1314_v50 }
 0x343   :  { %1390 = vmatmul.f32.vlgmr.msra.gmra.mxu2 %v1332_v49  ;;  %1410 = vmatmul.f32.vlgmr.msra.gmra.mxu3 %v1333_v62 }
 0x344   :  { %1445 = vmatpush.bf16.msrb.mxu2 %v2097_v23  ;;  %1522 = vmatpush.bf16.msrb.mxu3 %v2105_v25 }
 0x348   :  { %1446 = vmatpush.bf16.msrb.mxu2 %v2096_v45  ;;  %1523 = vmatpush.bf16.msrb.mxu3 %v2104_v43 }
 0x34c   :  { %1524 = vmatpush.bf16.msrb.mxu3 %v2103_v8 }
 0x350   :  { %1525 = vmatpush.bf16.msrb.mxu3 %v2102_v22 }
 0x354   :  { %1526 = vmatpush.bf16.msrb.mxu3 %v2101_v33 }
 0x358   :  { %1527 = vmatpush.bf16.msrb.mxu3 %v2100_v46 }
 0x35c   :  { %1528 = vmatpush.bf16.msrb.mxu3 %v2099_v58 }
 0x360   :  { %1529 = vmatpush.bf16.msrb.mxu3 %v2098_v56 }
 0x3a6   :  { %v1351_v36 = vpop.f32.mrf.mxu2  ;;  %v1371_v4 = vpop.f32.mrf.mxu3 }
 0x3a7   :  { %v1372_v57 = vadd.f32 %v1371_v4, %v1351_v36 }
 0x3c6   :  { %v1391_v34 = vpop.f32.mrf.mxu2  ;;  %v1411_v17 = vpop.f32.mrf.mxu3 }
 0x3c7   :  { %v1392_v13 = vadd.f32 %v1391_v34, %v1372_v57 }
 0x3c9   :  { %v1412_v3 = vadd.f32 %v1411_v17, %v1392_v13 }
 0x3cb   :  { %v1414_v53 = vpack.c.bf16 %v1412_v3, %v1412_v3 }
 0x3cd   :  { %1990 = vmatmul.msk.bf16.vlgmr.msrb.gmra.mxu2 %vm1435_vm4, %v1414_v53 }
 0x450   :  { %v1448_v30 = vpop.f32.mrf.mxu2 }
 0x451   :  { %v1449_v18 = vadd.f32 %v2120_v63, %v1448_v30 }
 0x453   :  { %v1452_v2 = vmax.f32 %v1449_v18, 0.0 }
 0x455   :  { %v1453_v54 = vpack.c.bf16 %v1452_v2, %v1452_v2 }
 0x457   :  { %1530 = vmatmul.bf16.vlgmr.msrb.gmra.mxu3 %v1453_v54 }
 0x458   :  { %v1450_v10 = vpop.f32.mrf.mxu2 }
 0x4da   :  { %v1531_v52 = vpop.f32.mrf.mxu3 }
 0x4db   :  { %v1532_v31 = vadd.f32 %v2121_v6, %v1531_v52 }
 0x4dd   :  { %v1535_v61 = vmul.f32 %v1532_v31, %v1532_v31 }
 0x4df   :  { %1536 = vadd.xlane.f32.xlu0 %v1535_v61 }
 0x4e2   :  { %v1533_v48 = vpop.f32.mrf.mxu3 }
 0x552   :  { %v1537_v47 = vpop.xlane.xlu0 %1536 }
 0x553   :  { %v1538_v9 = vmax.f32 %v1537_v47, 1e-24 }
 0x555   :  { %2124 = vrsqrt.f32 %v1538_v9  ;;  %vm1545_vm6 = vweird.f32 %v1538_v9 }
 0x55b   :  { %v2125_v19 = vpop.eup %2124 }
 0x55c   :  { %v1540_v20 = vmul.f32 %v2125_v19, %v1538_v9  ;;  %vm1546_vm5 = vweird.f32 %v2125_v19 }
 0x55d   :  { %vm1547_vm7 = vmor %vm1545_vm6, %vm1546_vm5 }
 0x55e   :  { %v1541_v41 = vmul.f32 %v2125_v19, %v1540_v20 }
 0x560   :  { %v1542_v55 = vmul.f32 0.5, %v1541_v41 }
 0x562   :  { %v1543_v28 = vsub.f32 1.5, %v1542_v55 }
 0x564   :  { %v1544_v15 = vmul.f32 %v2125_v19, %v1543_v28 }
 0x566   :  { %v1548_v42 = vsel %vm1547_vm7, %v2125_v19, %v1544_v15 }
 0x567   :  { %v1549_v24 = vmul.f32 %v1548_v42, %v1532_v31 }
 0x569   :  { %1566 = vmatpush.xpose.msra.mxu2 %v1549_v24  ;;  %1550 = vst [vmem:[#allocation4] sm:$0xff] %v1549_v24 }
 0x56a   :  { %1647 = dma.vmem_to_hbm [thread:$0]  %s1643_s8, 128, %s1645_s25, [#allocation5]  }
 0x56c   :  { %1567 = vmatmul.f32.vlgmr.msra.gmra.mxu2 %v1549_v24 }
 0x5ef   :  { %v1568_v27 = vpop.f32.mrf.mxu2 }
 0x5f0   :  { %v1571_v44 = vmul.f32 14.285714, %v1568_v27 }
 0x5f2   :  { %v1573_v60 = vsel %vm1572_vm8, %v1571_v44, -inf }
 0x5f3   :  { %1574 = vmax.xlane.f32.xlu0 %v1573_v60 }
 0x666   :  { %v1575_v14 = vpop.xlane.xlu0 %1574 }
 0x667   :  { %v1576_v39 = vsub.f32 %v1571_v44, %v1575_v14 }
 0x669   :  { %v1579_v5 = vmul.f32 1.442695, %v1576_v39 }
 0x66b   :  { %2126 = vpow2.f32 %v1579_v5 }
 0x671   :  { %v2127_v29 = vpop.eup %2126 }
 0x672   :  { %v1581_v37 = vmul.f32 %v2127_v29, %v1577_v59 }
 0x674   :  { %v1582_v0 = vsel %vm1572_vm8, %v1581_v37, 0.0 }
 0x675   :  { %1583 = vadd.xlane.f32.xlu1 %v1582_v0 }
 0x67d   :  { %1589 = vadd.xlane.f32.xlu1 %v1588_v1 }
 0x6e8   :  { %v1584_v12 = vpop.xlane.xlu1 %1583 }
 0x6e9   :  { %2128 = vlog2.f32 %v1584_v12 }
 0x6ef   :  { %v2129_v11 = vpop.eup %2128 }
 0x6f0   :  { %v1586_v7 = vmul.f32 0.6931472, %v2129_v11  ;;  %v1590_v32 = vpop.xlane.xlu1 %1589 }
 0x6f1   :  { %2130 = vrcp.f32 %v1590_v32  ;;  %vm1600_vm9 = vweird.f32 %v1590_v32  ;;  %v1606_v49 = vand.u32 2147483648, %v1590_v32  ;;  %v1604_v23 = vand.u32 2147483647, %v1590_v32 }
 0x6f2   :  { %v1587_v38 = vsub.f32 %v1576_v39, %v1586_v7 }
 0x6f3   :  { %v1607_v45 = vor.u32 1.1754944e-38, %v1606_v49  ;;  %vm1605_vm12 = vcmp.eq.f32.partialorder %v1604_v23, 8.507059e+37 }
 0x6f4   :  { %v1591_v26 = vmul.f32 %v1587_v38, %v1578_v21 }
 0x6f6   :  { %v1592_v40 = vsel %vm1572_vm8, %v1591_v26, 0.0 }
 0x6f7   :  { %1593 = vadd.xlane.f32.xlu2 %v1592_v40  ;;  %v2131_v51 = vpop.eup %2130 }
 0x6f8   :  { %v1596_v16 = vmul.f32 %v2131_v51, %v1590_v32  ;;  %vm1601_vm10 = vweird.f32 %v2131_v51 }
 0x6f9   :  { %vm1602_vm11 = vmor %vm1600_vm9, %vm1601_vm10 }
 0x6fa   :  { %v1597_v35 = vsub.f32 1.0, %v1596_v16 }
 0x6fc   :  { %v1598_v50 = vmul.f32 %v2131_v51, %v1597_v35 }
 0x6fe   :  { %v1599_v62 = vadd.f32 %v2131_v51, %v1598_v50 }
 0x700   :  { %v1603_v25 = vsel %vm1602_vm11, %v2131_v51, %v1599_v62 }
 0x701   :  { %v1608_v8 = vsel %vm1605_vm12, %v1607_v45, %v1603_v25 }
 0x76a   :  { %v1594_v43 = vpop.xlane.xlu2 %1593 }
 0x76b   :  { %v1609_v22 = vmul.f32 %v1608_v8, %v1594_v43 }
 0x76d   :  { %v1610_v33 = vmul.f32 -1.0, %v1609_v22 }
 0x76f   :  { %v1612_v36 = vsel %vm1611_vm13, %v1610_v33, 0.0 }
 0x770   :  { %1613 = vadd.xlane.f32.xlu2 %v1612_v36 }
 0x7e3   :  { %v1614_v4 = vpop.xlane.xlu2 %1613 }
 0x7e4   :  { %v1615_v46 = vrot.slane %v1614_v4, 4 }
 0x7e6   :  { %v1616_v57 = vadd.f32 %v1615_v46, %v1614_v4 }
 0x7e8   :  { %v1617_v34 = vrot.slane %v1616_v57, 2 }
 0x7ea   :  { %v1618_v17 = vadd.f32 %v1617_v34, %v1616_v57 }
 0x7ec   :  { %v1619_v13 = vrot.slane %v1618_v17, 1 }
 0x7ee   :  { %v1620_v3 = vadd.f32 %v1619_v13, %v1618_v17 }
 0x7f0   :  { %2115 = vpush %v1620_v3 }
 0x821   :  { %s2116_s29 = spop %2115 }
 0x822   :  { %v1622_v53 = vstv %s2116_s29 }
 0x823   :  { %v1623_v58 = vmul.f32 0.125, %v1622_v53 }
 0x825   :  { %1625 = vst.msk [vmem:[#allocation2] sm:$0x1] %vm1624_vm14, %v1623_v58 }
 0x826   :  { %1636 = dma.vmem_to_hbm [thread:$0]  %s1632_s1, 16, %s1634_s28, [#allocation3]  }
 0x827   :  { %2180 = dma.done.wait [#allocation3], 16  }
 0x828   :  { %2181 = vsyncadd [#allocation3], 4294967280 }
 0x829   :  { %2182 = dma.done.wait [#allocation5], 128  }
 0x82a   :  { %2183 = vsyncadd [#allocation5], 4294967168 }
 0x82b   :  { %1656 = vsyncpa [#allocation3], 1 }
 0x82c   :  { %1657 = vsyncpa [#allocation5], 1 }

</bundles_post_ra>
